<compile_context>
chip_gen: v6e
topology: v6e:2x2x1
jax: 0.10.0
libtpu: 0.0.40
codegen_flags: <defaults>
</compile_context>

<pallas_src>
import jax
import jax.numpy as jnp
from jax.experimental import pallas as pl
from jax.experimental.pallas import tpu as pltpu


def _round_up(a, m):
    return -(-a // m) * m


def _mlp_kernel(x_ref, w1_ref, b1_ref, wh_ref, bh_ref, w8_ref, b8_ref, o_ref):
    """Fused 8-layer MLP (nutANN forward) on one batch tile."""
    f32 = jnp.float32

    def lin(h, w, b):
        # Operands in the parameter dtype (bf16 in production) hit the MXU's
        # native bf16 path; accumulation stays f32.  Bias / ReLU / tanh stay
        # f32 (v5e-safe; negligible either way on v6e/v7x at these sizes).
        return jnp.dot(h.astype(w.dtype), w, preferred_element_type=f32) + b.astype(f32)

    # dropout1 (p=0.05) is identity in eval mode.
    # TODO(synk): training-mode dropout would need pltpu.prng_* masking.
    h = jnp.maximum(lin(x_ref[...], w1_ref[...], b1_ref[...]), 0.0)   # linear1 + relu
    for k in range(5):                                                # linear2..6 + relu
        h = jnp.maximum(lin(h, wh_ref[k], bh_ref[k]), 0.0)
    h = jnp.tanh(lin(h, wh_ref[5], bh_ref[5]))                        # linear7 + tanh
    h = lin(h, w8_ref[...], b8_ref[...])                              # linear8 (no act)

    # Lane-dense epilogue: o_ref may be a packed [block_b/pack, D_out*pack]
    # slab (full-width vst) instead of a masked [block_b, D_out] store.
    # Row-major order is unchanged, so the wrapper reshapes back for free.
    o_ref[...] = h.reshape(o_ref.shape).astype(o_ref.dtype)


def nut_ann_forward(x, params, *, block_b=None, param_dtype=jnp.bfloat16):
    """x: [B, D_in]; params: list of 8 (w [in, out], b [1, out]) tuples."""
    B, D_in = x.shape
    out_dtype = x.dtype

    cast = lambda a: a.astype(param_dtype)
    w1, b1 = cast(params[0][0]), cast(params[0][1])
    w8, b8 = cast(params[7][0]), cast(params[7][1])
    wh = jnp.stack([cast(w) for (w, _) in params[1:7]])   # [6, H, H]
    bh = jnp.stack([cast(b) for (_, b) in params[1:7]])   # [6, 1, H]
    H, D_out = w1.shape[1], w8.shape[1]

    # Pack `pack` batch rows per output row so output stores are 128-lane dense.
    pack = 128 // D_out if (0 < D_out < 128 and 128 % D_out == 0) else 1

    # ---- batch tiling -------------------------------------------------------
    if block_b is None:
        if B < 256:
            block_b = B                      # one grid step (fill/drain bound anyway)
        else:
            # >=2 "parallel" steps so both v7x TensorCores get work; cap at
            # 1024 rows so very large batches get >=4 pipelined steps.
            block_b = min(1024, _round_up(-(-B // 2), 128))
    else:
        block_b = max(block_b, 128)          # never tiny tiles (per-step overhead)
    if block_b < B:
        block_b = _round_up(block_b, max(128, 8 * pack))
    if block_b >= B:
        block_b = _round_up(B, pack)         # single block == full (padded) array
    n_blocks = -(-B // block_b)
    B_pad = n_blocks * block_b

    # NOTE: when B_pad > B this pad costs one extra HBM pass over x; for very
    # large batches prefer a block_b that divides B (auto default pads <=0.1%).
    x_in = x if B_pad == B else jnp.pad(x, ((0, B_pad - B), (0, 0)))

    param_arrays = (w1, b1, wh, bh, w8, b8)
    param_bytes = sum(int(a.size) * a.dtype.itemsize for a in param_arrays)

    def make_call(pk, single_buffer_params):
        pmode = {"pipeline_mode": pl.Buffered(1)} if single_buffer_params else {}

        def pspec(a):
            nd = a.ndim
            return pl.BlockSpec(a.shape, lambda i: (0,) * nd, **pmode)

        # VMEM budget: 2x x tile + params x buffer-count + a few live f32
        # activation temps + 2x out tile; 2x headroom, capped at v7x's 64 MiB.
        vmem = 2 * (2 * block_b * D_in * x_in.dtype.itemsize
                    + (1 if single_buffer_params else 2) * param_bytes
                    + 4 * block_b * max(H, D_in) * 4
                    + 2 * block_b * D_out * jnp.dtype(out_dtype).itemsize)
        vmem = int(min(max(vmem, 8 << 20), 64 << 20))

        return pl.pallas_call(
            _mlp_kernel,
            out_shape=jax.ShapeDtypeStruct((B_pad // pk, D_out * pk), out_dtype),
            grid_spec=pltpu.PrefetchScalarGridSpec(
                num_scalar_prefetch=0,
                grid=(n_blocks,),
                in_specs=[
                    pl.BlockSpec((block_b, D_in), lambda i: (i, 0)),  # x (batch-tiled)
                    pspec(w1), pspec(b1),                             # linear1
                    pspec(wh), pspec(bh),                             # linear2..7 (stacked)
                    pspec(w8), pspec(b8),                             # linear8
                ],
                out_specs=pl.BlockSpec((block_b // pk, D_out * pk), lambda i: (i, 0)),
            ),
            compiler_params=pltpu.CompilerParams(
                dimension_semantics=("parallel",),
                vmem_limit_bytes=vmem),
        )

    # Preferred config first; fall back if the packed-store reshape or
    # pl.Buffered(1) is not supported by the installed jax/Mosaic version.
    pack_opts = [pack] + ([1] if pack > 1 else [])
    buf_opts = [True, False] if hasattr(pl, "Buffered") else [False]
    out, err, used_pack = None, None, 1
    for pk in pack_opts:
        for buf in buf_opts:
            try:
                out = jax.block_until_ready(
                    make_call(pk, buf)(x_in, w1, b1, wh, bh, w8, b8))
                used_pack = pk
                break
            except Exception as e:           # conservative fallback path
                out, err = None, e
        if out is not None:
            break
    if out is None:
        raise err

    if used_pack > 1:
        out = out.reshape(B_pad, D_out)      # free: row-major layout unchanged
    return out[:B]


def init_params(key, D_in, H, D_out, dtype=jnp.float32):
    """Deterministic init mimicking nn.Linear shapes (stored as [in, out])."""
    dims = [(D_in, H)] + [(H, H)] * 6 + [(H, D_out)]
    params = []
    for (fi, fo) in dims:
        kw, kb, key = jax.random.split(key, 3)
        bound = 1.0 / (fi ** 0.5)
        w = jax.random.uniform(kw, (fi, fo), dtype, -bound, bound)
        b = jax.random.uniform(kb, (1, fo), dtype, -bound, bound)
        params.append((w, b))
    return params


def reference_forward(x, params):
    """Plain-JAX reference mirroring the kernel's mixed precision:
    dot operands in the params' dtype, f32 accumulation, f32 elementwise."""
    h = x
    for idx, (w, b) in enumerate(params):
        h = jnp.dot(h.astype(w.dtype), w,
                    precision=jax.lax.Precision.HIGHEST,
                    preferred_element_type=jnp.float32) + b.astype(jnp.float32)
        if idx < 6:
            h = jnp.maximum(h, 0.0)
        elif idx == 6:
            h = jnp.tanh(h)
    return h


if __name__ == "__main__":
    key = jax.random.PRNGKey(0)
    B, D_in, H, D_out = 16, 32, 64, 8
    kx, kp, kx2 = jax.random.split(key, 3)

    x = jax.random.normal(kx, (B, D_in), jnp.float32)
    params = init_params(kp, D_in, H, D_out)

    # 1) f32-parameter path (bit-accurate), single grid step, packed output.
    out = jax.block_until_ready(nut_ann_forward(x, params, param_dtype=jnp.float32))
    ref = reference_forward(x, params)
    assert out.shape == (B, D_out)
    assert jnp.allclose(out, ref, atol=1e-4, rtol=1e-4), "mismatch vs f32 reference"

    # 2) production path: bf16 MXU operands, auto-tiled + padded batch.
    B2 = 300
    x2 = jax.random.normal(kx2, (B2, D_in), jnp.float32)
    out2 = jax.block_until_ready(nut_ann_forward(x2, params))   # bf16 params, 2 tiles
    params_bf16 = [(w.astype(jnp.bfloat16), b.astype(jnp.bfloat16)) for (w, b) in params]
    ref2 = reference_forward(x2, params_bf16)
    assert out2.shape == (B2, D_out)
    assert jnp.allclose(out2, ref2, atol=2e-3, rtol=2e-3), "mismatch vs bf16 reference"

    print("KERNEL_OK")
</pallas_src>

<mosaic_0001>
module attributes {stable_mosaic.version = 11 : i64} {
  func.func @_mlp_kernel(%arg0: i32, %arg1: memref<16x32xf32, #tpu.memory_space<vmem>>, %arg2: memref<32x64xf32, #tpu.memory_space<vmem>>, %arg3: memref<1x64xf32, #tpu.memory_space<vmem>>, %arg4: memref<6x64x64xf32, #tpu.memory_space<vmem>>, %arg5: memref<6x1x64xf32, #tpu.memory_space<vmem>>, %arg6: memref<64x8xf32, #tpu.memory_space<vmem>>, %arg7: memref<1x8xf32, #tpu.memory_space<vmem>>, %arg8: memref<1x128xf32, #tpu.memory_space<vmem>>) attributes {dimension_semantics = [#tpu.dimension_semantics<parallel>], iteration_bounds = array<i64: 1>, scalar_prefetch = 0 : i64, scratch_operands = 0 : i64, tpu.core_type = #tpu.core_type<tc>, window_params = [{transform_indices = @transform_0, window_bounds = array<i64: 16, 32>}, {pipeline_mode = #tpu.pipeline_mode<synchronous>, transform_indices = @transform_1, window_bounds = array<i64: 32, 64>}, {pipeline_mode = #tpu.pipeline_mode<synchronous>, transform_indices = @transform_2, window_bounds = array<i64: 1, 64>}, {pipeline_mode = #tpu.pipeline_mode<synchronous>, transform_indices = @transform_3, window_bounds = array<i64: 6, 64, 64>}, {pipeline_mode = #tpu.pipeline_mode<synchronous>, transform_indices = @transform_4, window_bounds = array<i64: 6, 1, 64>}, {pipeline_mode = #tpu.pipeline_mode<synchronous>, transform_indices = @transform_5, window_bounds = array<i64: 64, 8>}, {pipeline_mode = #tpu.pipeline_mode<synchronous>, transform_indices = @transform_6, window_bounds = array<i64: 1, 8>}, {transform_indices = @transform_7, window_bounds = array<i64: 1, 128>}]} {
    %c0 = arith.constant 0 : index
    %c0_0 = arith.constant 0 : index
    %0 = vector.load %arg1[%c0, %c0_0] : memref<16x32xf32, #tpu.memory_space<vmem>>, vector<16x32xf32>
    %c0_1 = arith.constant 0 : index
    %c0_2 = arith.constant 0 : index
    %1 = vector.load %arg2[%c0_1, %c0_2] : memref<32x64xf32, #tpu.memory_space<vmem>>, vector<32x64xf32>
    %c0_3 = arith.constant 0 : index
    %c0_4 = arith.constant 0 : index
    %2 = vector.load %arg3[%c0_3, %c0_4] : memref<1x64xf32, #tpu.memory_space<vmem>>, vector<1x64xf32>
    %cst = arith.constant dense<0.000000e+00> : vector<16x64xf32>
    %3 = tpu.matmul %0, %1, %cst {dimension_numbers = #tpu.dot_dimension_numbers<[1], [0], [0], [1], [0, 0, 1, 1], [], []>} : vector<16x32xf32>, vector<32x64xf32>, vector<16x64xf32> -> vector<16x64xf32>
    %4 = vector.broadcast %2 : vector<1x64xf32> to vector<16x64xf32>
    %5 = arith.addf %3, %4 : vector<16x64xf32>
    %cst_5 = arith.constant 0.000000e+00 : f32
    %6 = vector.broadcast %cst_5 : f32 to vector<16x64xf32>
    %7 = arith.maximumf %5, %6 : vector<16x64xf32>
    %c0_6 = arith.constant 0 : index
    %c0_7 = arith.constant 0 : index
    %c0_8 = arith.constant 0 : index
    %8 = vector.load %arg4[%c0_6, %c0_7, %c0_8] : memref<6x64x64xf32, #tpu.memory_space<vmem>>, vector<1x64x64xf32>
    %9 = vector.shape_cast %8 : vector<1x64x64xf32> to vector<64x64xf32>
    %c0_9 = arith.constant 0 : index
    %c0_10 = arith.constant 0 : index
    %c0_11 = arith.constant 0 : index
    %10 = vector.load %arg5[%c0_9, %c0_10, %c0_11] : memref<6x1x64xf32, #tpu.memory_space<vmem>>, vector<1x1x64xf32>
    %11 = vector.shape_cast %10 : vector<1x1x64xf32> to vector<1x64xf32>
    %cst_12 = arith.constant dense<0.000000e+00> : vector<16x64xf32>
    %12 = tpu.matmul %7, %9, %cst_12 {dimension_numbers = #tpu.dot_dimension_numbers<[1], [0], [0], [1], [0, 0, 1, 1], [], []>} : vector<16x64xf32>, vector<64x64xf32>, vector<16x64xf32> -> vector<16x64xf32>
    %13 = vector.broadcast %11 : vector<1x64xf32> to vector<16x64xf32>
    %14 = arith.addf %12, %13 : vector<16x64xf32>
    %cst_13 = arith.constant 0.000000e+00 : f32
    %15 = vector.broadcast %cst_13 : f32 to vector<16x64xf32>
    %16 = arith.maximumf %14, %15 : vector<16x64xf32>
    %c1 = arith.constant 1 : index
    %c0_14 = arith.constant 0 : index
    %c0_15 = arith.constant 0 : index
    %17 = vector.load %arg4[%c1, %c0_14, %c0_15] : memref<6x64x64xf32, #tpu.memory_space<vmem>>, vector<1x64x64xf32>
    %18 = vector.shape_cast %17 : vector<1x64x64xf32> to vector<64x64xf32>
    %c1_16 = arith.constant 1 : index
    %c0_17 = arith.constant 0 : index
    %c0_18 = arith.constant 0 : index
    %19 = vector.load %arg5[%c1_16, %c0_17, %c0_18] : memref<6x1x64xf32, #tpu.memory_space<vmem>>, vector<1x1x64xf32>
    %20 = vector.shape_cast %19 : vector<1x1x64xf32> to vector<1x64xf32>
    %cst_19 = arith.constant dense<0.000000e+00> : vector<16x64xf32>
    %21 = tpu.matmul %16, %18, %cst_19 {dimension_numbers = #tpu.dot_dimension_numbers<[1], [0], [0], [1], [0, 0, 1, 1], [], []>} : vector<16x64xf32>, vector<64x64xf32>, vector<16x64xf32> -> vector<16x64xf32>
    %22 = vector.broadcast %20 : vector<1x64xf32> to vector<16x64xf32>
    %23 = arith.addf %21, %22 : vector<16x64xf32>
    %cst_20 = arith.constant 0.000000e+00 : f32
    %24 = vector.broadcast %cst_20 : f32 to vector<16x64xf32>
    %25 = arith.maximumf %23, %24 : vector<16x64xf32>
    %c2 = arith.constant 2 : index
    %c0_21 = arith.constant 0 : index
    %c0_22 = arith.constant 0 : index
    %26 = vector.load %arg4[%c2, %c0_21, %c0_22] : memref<6x64x64xf32, #tpu.memory_space<vmem>>, vector<1x64x64xf32>
    %27 = vector.shape_cast %26 : vector<1x64x64xf32> to vector<64x64xf32>
    %c2_23 = arith.constant 2 : index
    %c0_24 = arith.constant 0 : index
    %c0_25 = arith.constant 0 : index
    %28 = vector.load %arg5[%c2_23, %c0_24, %c0_25] : memref<6x1x64xf32, #tpu.memory_space<vmem>>, vector<1x1x64xf32>
    %29 = vector.shape_cast %28 : vector<1x1x64xf32> to vector<1x64xf32>
    %cst_26 = arith.constant dense<0.000000e+00> : vector<16x64xf32>
    %30 = tpu.matmul %25, %27, %cst_26 {dimension_numbers = #tpu.dot_dimension_numbers<[1], [0], [0], [1], [0, 0, 1, 1], [], []>} : vector<16x64xf32>, vector<64x64xf32>, vector<16x64xf32> -> vector<16x64xf32>
    %31 = vector.broadcast %29 : vector<1x64xf32> to vector<16x64xf32>
    %32 = arith.addf %30, %31 : vector<16x64xf32>
    %cst_27 = arith.constant 0.000000e+00 : f32
    %33 = vector.broadcast %cst_27 : f32 to vector<16x64xf32>
    %34 = arith.maximumf %32, %33 : vector<16x64xf32>
    %c3 = arith.constant 3 : index
    %c0_28 = arith.constant 0 : index
    %c0_29 = arith.constant 0 : index
    %35 = vector.load %arg4[%c3, %c0_28, %c0_29] : memref<6x64x64xf32, #tpu.memory_space<vmem>>, vector<1x64x64xf32>
    %36 = vector.shape_cast %35 : vector<1x64x64xf32> to vector<64x64xf32>
    %c3_30 = arith.constant 3 : index
    %c0_31 = arith.constant 0 : index
    %c0_32 = arith.constant 0 : index
    %37 = vector.load %arg5[%c3_30, %c0_31, %c0_32] : memref<6x1x64xf32, #tpu.memory_space<vmem>>, vector<1x1x64xf32>
    %38 = vector.shape_cast %37 : vector<1x1x64xf32> to vector<1x64xf32>
    %cst_33 = arith.constant dense<0.000000e+00> : vector<16x64xf32>
    %39 = tpu.matmul %34, %36, %cst_33 {dimension_numbers = #tpu.dot_dimension_numbers<[1], [0], [0], [1], [0, 0, 1, 1], [], []>} : vector<16x64xf32>, vector<64x64xf32>, vector<16x64xf32> -> vector<16x64xf32>
    %40 = vector.broadcast %38 : vector<1x64xf32> to vector<16x64xf32>
    %41 = arith.addf %39, %40 : vector<16x64xf32>
    %cst_34 = arith.constant 0.000000e+00 : f32
    %42 = vector.broadcast %cst_34 : f32 to vector<16x64xf32>
    %43 = arith.maximumf %41, %42 : vector<16x64xf32>
    %c4 = arith.constant 4 : index
    %c0_35 = arith.constant 0 : index
    %c0_36 = arith.constant 0 : index
    %44 = vector.load %arg4[%c4, %c0_35, %c0_36] : memref<6x64x64xf32, #tpu.memory_space<vmem>>, vector<1x64x64xf32>
    %45 = vector.shape_cast %44 : vector<1x64x64xf32> to vector<64x64xf32>
    %c4_37 = arith.constant 4 : index
    %c0_38 = arith.constant 0 : index
    %c0_39 = arith.constant 0 : index
    %46 = vector.load %arg5[%c4_37, %c0_38, %c0_39] : memref<6x1x64xf32, #tpu.memory_space<vmem>>, vector<1x1x64xf32>
    %47 = vector.shape_cast %46 : vector<1x1x64xf32> to vector<1x64xf32>
    %cst_40 = arith.constant dense<0.000000e+00> : vector<16x64xf32>
    %48 = tpu.matmul %43, %45, %cst_40 {dimension_numbers = #tpu.dot_dimension_numbers<[1], [0], [0], [1], [0, 0, 1, 1], [], []>} : vector<16x64xf32>, vector<64x64xf32>, vector<16x64xf32> -> vector<16x64xf32>
    %49 = vector.broadcast %47 : vector<1x64xf32> to vector<16x64xf32>
    %50 = arith.addf %48, %49 : vector<16x64xf32>
    %cst_41 = arith.constant 0.000000e+00 : f32
    %51 = vector.broadcast %cst_41 : f32 to vector<16x64xf32>
    %52 = arith.maximumf %50, %51 : vector<16x64xf32>
    %c5 = arith.constant 5 : index
    %c0_42 = arith.constant 0 : index
    %c0_43 = arith.constant 0 : index
    %53 = vector.load %arg4[%c5, %c0_42, %c0_43] : memref<6x64x64xf32, #tpu.memory_space<vmem>>, vector<1x64x64xf32>
    %54 = vector.shape_cast %53 : vector<1x64x64xf32> to vector<64x64xf32>
    %c5_44 = arith.constant 5 : index
    %c0_45 = arith.constant 0 : index
    %c0_46 = arith.constant 0 : index
    %55 = vector.load %arg5[%c5_44, %c0_45, %c0_46] : memref<6x1x64xf32, #tpu.memory_space<vmem>>, vector<1x1x64xf32>
    %56 = vector.shape_cast %55 : vector<1x1x64xf32> to vector<1x64xf32>
    %cst_47 = arith.constant dense<0.000000e+00> : vector<16x64xf32>
    %57 = tpu.matmul %52, %54, %cst_47 {dimension_numbers = #tpu.dot_dimension_numbers<[1], [0], [0], [1], [0, 0, 1, 1], [], []>} : vector<16x64xf32>, vector<64x64xf32>, vector<16x64xf32> -> vector<16x64xf32>
    %58 = vector.broadcast %56 : vector<1x64xf32> to vector<16x64xf32>
    %59 = arith.addf %57, %58 : vector<16x64xf32>
    %60 = math.tanh %59 : vector<16x64xf32>
    %c0_48 = arith.constant 0 : index
    %c0_49 = arith.constant 0 : index
    %61 = vector.load %arg6[%c0_48, %c0_49] : memref<64x8xf32, #tpu.memory_space<vmem>>, vector<64x8xf32>
    %c0_50 = arith.constant 0 : index
    %c0_51 = arith.constant 0 : index
    %62 = vector.load %arg7[%c0_50, %c0_51] : memref<1x8xf32, #tpu.memory_space<vmem>>, vector<1x8xf32>
    %cst_52 = arith.constant dense<0.000000e+00> : vector<16x8xf32>
    %63 = tpu.matmul %60, %61, %cst_52 {dimension_numbers = #tpu.dot_dimension_numbers<[1], [0], [0], [1], [0, 0, 1, 1], [], []>} : vector<16x64xf32>, vector<64x8xf32>, vector<16x8xf32> -> vector<16x8xf32>
    %64 = vector.broadcast %62 : vector<1x8xf32> to vector<16x8xf32>
    %65 = arith.addf %63, %64 : vector<16x8xf32>
    %66 = vector.shape_cast %65 : vector<16x8xf32> to vector<1x128xf32>
    %c0_53 = arith.constant 0 : index
    %c0_54 = arith.constant 0 : index
    %67 = vector.load %arg8[%c0_53, %c0_54] : memref<1x128xf32, #tpu.memory_space<vmem>>, vector<1x128xf32>
    tpu.vector_store %arg8[%c0_53, %c0_54], %66 {strides = array<i32>} : memref<1x128xf32, #tpu.memory_space<vmem>>, vector<1x128xf32>,
    return
  }
  func.func @transform_0(%arg0: i32) -> (i32, i32) {
    %c0_i32 = arith.constant 0 : i32
    %c0_i32_0 = arith.constant 0 : i32
    return %arg0, %c0_i32 : i32, i32
  }
  func.func @transform_1(%arg0: i32) -> (i32, i32) {
    %c0_i32 = arith.constant 0 : i32
    %c0_i32_0 = arith.constant 0 : i32
    %c0_i32_1 = arith.constant 0 : i32
    return %c0_i32, %c0_i32_0 : i32, i32
  }
  func.func @transform_2(%arg0: i32) -> (i32, i32) {
    %c0_i32 = arith.constant 0 : i32
    %c0_i32_0 = arith.constant 0 : i32
    %c0_i32_1 = arith.constant 0 : i32
    return %c0_i32, %c0_i32_0 : i32, i32
  }
  func.func @transform_3(%arg0: i32) -> (i32, i32, i32) {
    %c0_i32 = arith.constant 0 : i32
    %c0_i32_0 = arith.constant 0 : i32
    %c0_i32_1 = arith.constant 0 : i32
    %c0_i32_2 = arith.constant 0 : i32
    return %c0_i32, %c0_i32_0, %c0_i32_1 : i32, i32, i32
  }
  func.func @transform_4(%arg0: i32) -> (i32, i32, i32) {
    %c0_i32 = arith.constant 0 : i32
    %c0_i32_0 = arith.constant 0 : i32
    %c0_i32_1 = arith.constant 0 : i32
    %c0_i32_2 = arith.constant 0 : i32
    return %c0_i32, %c0_i32_0, %c0_i32_1 : i32, i32, i32
  }
  func.func @transform_5(%arg0: i32) -> (i32, i32) {
    %c0_i32 = arith.constant 0 : i32
    %c0_i32_0 = arith.constant 0 : i32
    %c0_i32_1 = arith.constant 0 : i32
    return %c0_i32, %c0_i32_0 : i32, i32
  }
  func.func @transform_6(%arg0: i32) -> (i32, i32) {
    %c0_i32 = arith.constant 0 : i32
    %c0_i32_0 = arith.constant 0 : i32
    %c0_i32_1 = arith.constant 0 : i32
    return %c0_i32, %c0_i32_0 : i32, i32
  }
  func.func @transform_7(%arg0: i32) -> (i32, i32) {
    %c0_i32 = arith.constant 0 : i32
    %c0_i32_0 = arith.constant 0 : i32
    return %arg0, %c0_i32 : i32, i32
  }
}

module attributes {stable_mosaic.version = 11 : i64} {
  func.func @_mlp_kernel(%arg0: i32, %arg1: memref<16x32xf32, #tpu.memory_space<vmem>>, %arg2: memref<32x64xf32, #tpu.memory_space<vmem>>, %arg3: memref<1x64xf32, #tpu.memory_space<vmem>>, %arg4: memref<6x64x64xf32, #tpu.memory_space<vmem>>, %arg5: memref<6x1x64xf32, #tpu.memory_space<vmem>>, %arg6: memref<64x8xf32, #tpu.memory_space<vmem>>, %arg7: memref<1x8xf32, #tpu.memory_space<vmem>>, %arg8: memref<1x128xf32, #tpu.memory_space<vmem>>) attributes {dimension_semantics = [#tpu.dimension_semantics<parallel>], iteration_bounds = array<i64: 1>, scalar_prefetch = 0 : i64, scratch_operands = 0 : i64, tpu.core_type = #tpu.core_type<tc>, window_params = [{transform_indices = @transform_0, window_bounds = array<i64: 16, 32>}, {pipeline_mode = #tpu.pipeline_mode<synchronous>, transform_indices = @transform_1, window_bounds = array<i64: 32, 64>}, {pipeline_mode = #tpu.pipeline_mode<synchronous>, transform_indices = @transform_2, window_bounds = array<i64: 1, 64>}, {pipeline_mode = #tpu.pipeline_mode<synchronous>, transform_indices = @transform_3, window_bounds = array<i64: 6, 64, 64>}, {pipeline_mode = #tpu.pipeline_mode<synchronous>, transform_indices = @transform_4, window_bounds = array<i64: 6, 1, 64>}, {pipeline_mode = #tpu.pipeline_mode<synchronous>, transform_indices = @transform_5, window_bounds = array<i64: 64, 8>}, {pipeline_mode = #tpu.pipeline_mode<synchronous>, transform_indices = @transform_6, window_bounds = array<i64: 1, 8>}, {transform_indices = @transform_7, window_bounds = array<i64: 1, 128>}]} {
    %c0 = arith.constant 0 : index
    %c0_0 = arith.constant 0 : index
    %0 = vector.load %arg1[%c0, %c0_0] : memref<16x32xf32, #tpu.memory_space<vmem>>, vector<16x32xf32>
    %c0_1 = arith.constant 0 : index
    %c0_2 = arith.constant 0 : index
    %1 = vector.load %arg2[%c0_1, %c0_2] : memref<32x64xf32, #tpu.memory_space<vmem>>, vector<32x64xf32>
    %c0_3 = arith.constant 0 : index
    %c0_4 = arith.constant 0 : index
    %2 = vector.load %arg3[%c0_3, %c0_4] : memref<1x64xf32, #tpu.memory_space<vmem>>, vector<1x64xf32>
    %cst = arith.constant dense<0.000000e+00> : vector<16x64xf32>
    %3 = tpu.matmul %0, %1, %cst {dimension_numbers = #tpu.dot_dimension_numbers<[1], [0], [0], [1], [0, 0, 1, 1], [], []>} : vector<16x32xf32>, vector<32x64xf32>, vector<16x64xf32> -> vector<16x64xf32>
    %4 = vector.broadcast %2 : vector<1x64xf32> to vector<16x64xf32>
    %5 = arith.addf %3, %4 : vector<16x64xf32>
    %cst_5 = arith.constant 0.000000e+00 : f32
    %6 = vector.broadcast %cst_5 : f32 to vector<16x64xf32>
    %7 = arith.maximumf %5, %6 : vector<16x64xf32>
    %c0_6 = arith.constant 0 : index
    %c0_7 = arith.constant 0 : index
    %c0_8 = arith.constant 0 : index
    %8 = vector.load %arg4[%c0_6, %c0_7, %c0_8] : memref<6x64x64xf32, #tpu.memory_space<vmem>>, vector<1x64x64xf32>
    %9 = vector.shape_cast %8 : vector<1x64x64xf32> to vector<64x64xf32>
    %c0_9 = arith.constant 0 : index
    %c0_10 = arith.constant 0 : index
    %c0_11 = arith.constant 0 : index
    %10 = vector.load %arg5[%c0_9, %c0_10, %c0_11] : memref<6x1x64xf32, #tpu.memory_space<vmem>>, vector<1x1x64xf32>
    %11 = vector.shape_cast %10 : vector<1x1x64xf32> to vector<1x64xf32>
    %cst_12 = arith.constant dense<0.000000e+00> : vector<16x64xf32>
    %12 = tpu.matmul %7, %9, %cst_12 {dimension_numbers = #tpu.dot_dimension_numbers<[1], [0], [0], [1], [0, 0, 1, 1], [], []>} : vector<16x64xf32>, vector<64x64xf32>, vector<16x64xf32> -> vector<16x64xf32>
    %13 = vector.broadcast %11 : vector<1x64xf32> to vector<16x64xf32>
    %14 = arith.addf %12, %13 : vector<16x64xf32>
    %cst_13 = arith.constant 0.000000e+00 : f32
    %15 = vector.broadcast %cst_13 : f32 to vector<16x64xf32>
    %16 = arith.maximumf %14, %15 : vector<16x64xf32>
    %c1 = arith.constant 1 : index
    %c0_14 = arith.constant 0 : index
    %c0_15 = arith.constant 0 : index
    %17 = vector.load %arg4[%c1, %c0_14, %c0_15] : memref<6x64x64xf32, #tpu.memory_space<vmem>>, vector<1x64x64xf32>
    %18 = vector.shape_cast %17 : vector<1x64x64xf32> to vector<64x64xf32>
    %c1_16 = arith.constant 1 : index
    %c0_17 = arith.constant 0 : index
    %c0_18 = arith.constant 0 : index
    %19 = vector.load %arg5[%c1_16, %c0_17, %c0_18] : memref<6x1x64xf32, #tpu.memory_space<vmem>>, vector<1x1x64xf32>
    %20 = vector.shape_cast %19 : vector<1x1x64xf32> to vector<1x64xf32>
    %cst_19 = arith.constant dense<0.000000e+00> : vector<16x64xf32>
    %21 = tpu.matmul %16, %18, %cst_19 {dimension_numbers = #tpu.dot_dimension_numbers<[1], [0], [0], [1], [0, 0, 1, 1], [], []>} : vector<16x64xf32>, vector<64x64xf32>, vector<16x64xf32> -> vector<16x64xf32>
    %22 = vector.broadcast %20 : vector<1x64xf32> to vector<16x64xf32>
    %23 = arith.addf %21, %22 : vector<16x64xf32>
    %cst_20 = arith.constant 0.000000e+00 : f32
    %24 = vector.broadcast %cst_20 : f32 to vector<16x64xf32>
    %25 = arith.maximumf %23, %24 : vector<16x64xf32>
    %c2 = arith.constant 2 : index
    %c0_21 = arith.constant 0 : index
    %c0_22 = arith.constant 0 : index
    %26 = vector.load %arg4[%c2, %c0_21, %c0_22] : memref<6x64x64xf32, #tpu.memory_space<vmem>>, vector<1x64x64xf32>
    %27 = vector.shape_cast %26 : vector<1x64x64xf32> to vector<64x64xf32>
    %c2_23 = arith.constant 2 : index
    %c0_24 = arith.constant 0 : index
    %c0_25 = arith.constant 0 : index
    %28 = vector.load %arg5[%c2_23, %c0_24, %c0_25] : memref<6x1x64xf32, #tpu.memory_space<vmem>>, vector<1x1x64xf32>
    %29 = vector.shape_cast %28 : vector<1x1x64xf32> to vector<1x64xf32>
    %cst_26 = arith.constant dense<0.000000e+00> : vector<16x64xf32>
    %30 = tpu.matmul %25, %27, %cst_26 {dimension_numbers = #tpu.dot_dimension_numbers<[1], [0], [0], [1], [0, 0, 1, 1], [], []>} : vector<16x64xf32>, vector<64x64xf32>, vector<16x64xf32> -> vector<16x64xf32>
    %31 = vector.broadcast %29 : vector<1x64xf32> to vector<16x64xf32>
    %32 = arith.addf %30, %31 : vector<16x64xf32>
    %cst_27 = arith.constant 0.000000e+00 : f32
    %33 = vector.broadcast %cst_27 : f32 to vector<16x64xf32>
    %34 = arith.maximumf %32, %33 : vector<16x64xf32>
    %c3 = arith.constant 3 : index
    %c0_28 = arith.constant 0 : index
    %c0_29 = arith.constant 0 : index
    %35 = vector.load %arg4[%c3, %c0_28, %c0_29] : memref<6x64x64xf32, #tpu.memory_space<vmem>>, vector<1x64x64xf32>
    %36 = vector.shape_cast %35 : vector<1x64x64xf32> to vector<64x64xf32>
    %c3_30 = arith.constant 3 : index
    %c0_31 = arith.constant 0 : index
    %c0_32 = arith.constant 0 : index
    %37 = vector.load %arg5[%c3_30, %c0_31, %c0_32] : memref<6x1x64xf32, #tpu.memory_space<vmem>>, vector<1x1x64xf32>
    %38 = vector.shape_cast %37 : vector<1x1x64xf32> to vector<1x64xf32>
    %cst_33 = arith.constant dense<0.000000e+00> : vector<16x64xf32>
    %39 = tpu.matmul %34, %36, %cst_33 {dimension_numbers = #tpu.dot_dimension_numbers<[1], [0], [0], [1], [0, 0, 1, 1], [], []>} : vector<16x64xf32>, vector<64x64xf32>, vector<16x64xf32> -> vector<16x64xf32>
    %40 = vector.broadcast %38 : vector<1x64xf32> to vector<16x64xf32>
    %41 = arith.addf %39, %40 : vector<16x64xf32>
    %cst_34 = arith.constant 0.000000e+00 : f32
    %42 = vector.broadcast %cst_34 : f32 to vector<16x64xf32>
    %43 = arith.maximumf %41, %42 : vector<16x64xf32>
    %c4 = arith.constant 4 : index
    %c0_35 = arith.constant 0 : index
    %c0_36 = arith.constant 0 : index
    %44 = vector.load %arg4[%c4, %c0_35, %c0_36] : memref<6x64x64xf32, #tpu.memory_space<vmem>>, vector<1x64x64xf32>
    %45 = vector.shape_cast %44 : vector<1x64x64xf32> to vector<64x64xf32>
    %c4_37 = arith.constant 4 : index
    %c0_38 = arith.constant 0 : index
    %c0_39 = arith.constant 0 : index
    %46 = vector.load %arg5[%c4_37, %c0_38, %c0_39] : memref<6x1x64xf32, #tpu.memory_space<vmem>>, vector<1x1x64xf32>
    %47 = vector.shape_cast %46 : vector<1x1x64xf32> to vector<1x64xf32>
    %cst_40 = arith.constant dense<0.000000e+00> : vector<16x64xf32>
    %48 = tpu.matmul %43, %45, %cst_40 {dimension_numbers = #tpu.dot_dimension_numbers<[1], [0], [0], [1], [0, 0, 1, 1], [], []>} : vector<16x64xf32>, vector<64x64xf32>, vector<16x64xf32> -> vector<16x64xf32>
    %49 = vector.broadcast %47 : vector<1x64xf32> to vector<16x64xf32>
    %50 = arith.addf %48, %49 : vector<16x64xf32>
    %cst_41 = arith.constant 0.000000e+00 : f32
    %51 = vector.broadcast %cst_41 : f32 to vector<16x64xf32>
    %52 = arith.maximumf %50, %51 : vector<16x64xf32>
    %c5 = arith.constant 5 : index
    %c0_42 = arith.constant 0 : index
    %c0_43 = arith.constant 0 : index
    %53 = vector.load %arg4[%c5, %c0_42, %c0_43] : memref<6x64x64xf32, #tpu.memory_space<vmem>>, vector<1x64x64xf32>
    %54 = vector.shape_cast %53 : vector<1x64x64xf32> to vector<64x64xf32>
    %c5_44 = arith.constant 5 : index
    %c0_45 = arith.constant 0 : index
    %c0_46 = arith.constant 0 : index
    %55 = vector.load %arg5[%c5_44, %c0_45, %c0_46] : memref<6x1x64xf32, #tpu.memory_space<vmem>>, vector<1x1x64xf32>
    %56 = vector.shape_cast %55 : vector<1x1x64xf32> to vector<1x64xf32>
    %cst_47 = arith.constant dense<0.000000e+00> : vector<16x64xf32>
    %57 = tpu.matmul %52, %54, %cst_47 {dimension_numbers = #tpu.dot_dimension_numbers<[1], [0], [0], [1], [0, 0, 1, 1], [], []>} : vector<16x64xf32>, vector<64x64xf32>, vector<16x64xf32> -> vector<16x64xf32>
    %58 = vector.broadcast %56 : vector<1x64xf32> to vector<16x64xf32>
    %59 = arith.addf %57, %58 : vector<16x64xf32>
    %60 = math.tanh %59 : vector<16x64xf32>
    %c0_48 = arith.constant 0 : index
    %c0_49 = arith.constant 0 : index
    %61 = vector.load %arg6[%c0_48, %c0_49] : memref<64x8xf32, #tpu.memory_space<vmem>>, vector<64x8xf32>
    %c0_50 = arith.constant 0 : index
    %c0_51 = arith.constant 0 : index
    %62 = vector.load %arg7[%c0_50, %c0_51] : memref<1x8xf32, #tpu.memory_space<vmem>>, vector<1x8xf32>
    %cst_52 = arith.constant dense<0.000000e+00> : vector<16x8xf32>
    %63 = tpu.matmul %60, %61, %cst_52 {dimension_numbers = #tpu.dot_dimension_numbers<[1], [0], [0], [1], [0, 0, 1, 1], [], []>} : vector<16x64xf32>, vector<64x8xf32>, vector<16x8xf32> -> vector<16x8xf32>
    %64 = vector.broadcast %62 : vector<1x8xf32> to vector<16x8xf32>
    %65 = arith.addf %63, %64 : vector<16x8xf32>
    %66 = vector.shape_cast %65 : vector<16x8xf32> to vector<1x128xf32>
    %c0_53 = arith.constant 0 : index
    %c0_54 = arith.constant 0 : index
    %67 = vector.load %arg8[%c0_53, %c0_54] : memref<1x128xf32, #tpu.memory_space<vmem>>, vector<1x128xf32>
    tpu.vector_store %arg8[%c0_53, %c0_54], %66 {strides = array<i32>} : memref<1x128xf32, #tpu.memory_space<vmem>>, vector<1x128xf32>,
    return
  }
  func.func @transform_0(%arg0: i32) -> (i32, i32) {
    %c0_i32 = arith.constant 0 : i32
    %c0_i32_0 = arith.constant 0 : i32
    return %arg0, %c0_i32 : i32, i32
  }
  func.func @transform_1(%arg0: i32) -> (i32, i32) {
    %c0_i32 = arith.constant 0 : i32
    %c0_i32_0 = arith.constant 0 : i32
    %c0_i32_1 = arith.constant 0 : i32
    return %c0_i32, %c0_i32_0 : i32, i32
  }
  func.func @transform_2(%arg0: i32) -> (i32, i32) {
    %c0_i32 = arith.constant 0 : i32
    %c0_i32_0 = arith.constant 0 : i32
    %c0_i32_1 = arith.constant 0 : i32
    return %c0_i32, %c0_i32_0 : i32, i32
  }
  func.func @transform_3(%arg0: i32) -> (i32, i32, i32) {
    %c0_i32 = arith.constant 0 : i32
    %c0_i32_0 = arith.constant 0 : i32
    %c0_i32_1 = arith.constant 0 : i32
    %c0_i32_2 = arith.constant 0 : i32
    return %c0_i32, %c0_i32_0, %c0_i32_1 : i32, i32, i32
  }
  func.func @transform_4(%arg0: i32) -> (i32, i32, i32) {
    %c0_i32 = arith.constant 0 : i32
    %c0_i32_0 = arith.constant 0 : i32
    %c0_i32_1 = arith.constant 0 : i32
    %c0_i32_2 = arith.constant 0 : i32
    return %c0_i32, %c0_i32_0, %c0_i32_1 : i32, i32, i32
  }
  func.func @transform_5(%arg0: i32) -> (i32, i32) {
    %c0_i32 = arith.constant 0 : i32
    %c0_i32_0 = arith.constant 0 : i32
    %c0_i32_1 = arith.constant 0 : i32
    return %c0_i32, %c0_i32_0 : i32, i32
  }
  func.func @transform_6(%arg0: i32) -> (i32, i32) {
    %c0_i32 = arith.constant 0 : i32
    %c0_i32_0 = arith.constant 0 : i32
    %c0_i32_1 = arith.constant 0 : i32
    return %c0_i32, %c0_i32_0 : i32, i32
  }
  func.func @transform_7(%arg0: i32) -> (i32, i32) {
    %c0_i32 = arith.constant 0 : i32
    %c0_i32_0 = arith.constant 0 : i32
    return %arg0, %c0_i32 : i32, i32
  }
}

module attributes {stable_mosaic.version = 11 : i64} {
  func.func @_mlp_kernel(%arg0: i32, %arg1: memref<16x32xf32, #tpu.memory_space<vmem>>, %arg2: memref<32x64xf32, #tpu.memory_space<vmem>>, %arg3: memref<1x64xf32, #tpu.memory_space<vmem>>, %arg4: memref<6x64x64xf32, #tpu.memory_space<vmem>>, %arg5: memref<6x1x64xf32, #tpu.memory_space<vmem>>, %arg6: memref<64x8xf32, #tpu.memory_space<vmem>>, %arg7: memref<1x8xf32, #tpu.memory_space<vmem>>, %arg8: memref<16x8xf32, #tpu.memory_space<vmem>>) attributes {dimension_semantics = [#tpu.dimension_semantics<parallel>], iteration_bounds = array<i64: 1>, scalar_prefetch = 0 : i64, scratch_operands = 0 : i64, tpu.core_type = #tpu.core_type<tc>, window_params = [{transform_indices = @transform_0, window_bounds = array<i64: 16, 32>}, {pipeline_mode = #tpu.pipeline_mode<synchronous>, transform_indices = @transform_1, window_bounds = array<i64: 32, 64>}, {pipeline_mode = #tpu.pipeline_mode<synchronous>, transform_indices = @transform_2, window_bounds = array<i64: 1, 64>}, {pipeline_mode = #tpu.pipeline_mode<synchronous>, transform_indices = @transform_3, window_bounds = array<i64: 6, 64, 64>}, {pipeline_mode = #tpu.pipeline_mode<synchronous>, transform_indices = @transform_4, window_bounds = array<i64: 6, 1, 64>}, {pipeline_mode = #tpu.pipeline_mode<synchronous>, transform_indices = @transform_5, window_bounds = array<i64: 64, 8>}, {pipeline_mode = #tpu.pipeline_mode<synchronous>, transform_indices = @transform_6, window_bounds = array<i64: 1, 8>}, {transform_indices = @transform_7, window_bounds = array<i64: 16, 8>}]} {
    %c0 = arith.constant 0 : index
    %c0_0 = arith.constant 0 : index
    %0 = vector.load %arg1[%c0, %c0_0] : memref<16x32xf32, #tpu.memory_space<vmem>>, vector<16x32xf32>
    %c0_1 = arith.constant 0 : index
    %c0_2 = arith.constant 0 : index
    %1 = vector.load %arg2[%c0_1, %c0_2] : memref<32x64xf32, #tpu.memory_space<vmem>>, vector<32x64xf32>
    %c0_3 = arith.constant 0 : index
    %c0_4 = arith.constant 0 : index
    %2 = vector.load %arg3[%c0_3, %c0_4] : memref<1x64xf32, #tpu.memory_space<vmem>>, vector<1x64xf32>
    %cst = arith.constant dense<0.000000e+00> : vector<16x64xf32>
    %3 = tpu.matmul %0, %1, %cst {dimension_numbers = #tpu.dot_dimension_numbers<[1], [0], [0], [1], [0, 0, 1, 1], [], []>} : vector<16x32xf32>, vector<32x64xf32>, vector<16x64xf32> -> vector<16x64xf32>
    %4 = vector.broadcast %2 : vector<1x64xf32> to vector<16x64xf32>
    %5 = arith.addf %3, %4 : vector<16x64xf32>
    %cst_5 = arith.constant 0.000000e+00 : f32
    %6 = vector.broadcast %cst_5 : f32 to vector<16x64xf32>
    %7 = arith.maximumf %5, %6 : vector<16x64xf32>
    %c0_6 = arith.constant 0 : index
    %c0_7 = arith.constant 0 : index
    %c0_8 = arith.constant 0 : index
    %8 = vector.load %arg4[%c0_6, %c0_7, %c0_8] : memref<6x64x64xf32, #tpu.memory_space<vmem>>, vector<1x64x64xf32>
    %9 = vector.shape_cast %8 : vector<1x64x64xf32> to vector<64x64xf32>
    %c0_9 = arith.constant 0 : index
    %c0_10 = arith.constant 0 : index
    %c0_11 = arith.constant 0 : index
    %10 = vector.load %arg5[%c0_9, %c0_10, %c0_11] : memref<6x1x64xf32, #tpu.memory_space<vmem>>, vector<1x1x64xf32>
    %11 = vector.shape_cast %10 : vector<1x1x64xf32> to vector<1x64xf32>
    %cst_12 = arith.constant dense<0.000000e+00> : vector<16x64xf32>
    %12 = tpu.matmul %7, %9, %cst_12 {dimension_numbers = #tpu.dot_dimension_numbers<[1], [0], [0], [1], [0, 0, 1, 1], [], []>} : vector<16x64xf32>, vector<64x64xf32>, vector<16x64xf32> -> vector<16x64xf32>
    %13 = vector.broadcast %11 : vector<1x64xf32> to vector<16x64xf32>
    %14 = arith.addf %12, %13 : vector<16x64xf32>
    %cst_13 = arith.constant 0.000000e+00 : f32
    %15 = vector.broadcast %cst_13 : f32 to vector<16x64xf32>
    %16 = arith.maximumf %14, %15 : vector<16x64xf32>
    %c1 = arith.constant 1 : index
    %c0_14 = arith.constant 0 : index
    %c0_15 = arith.constant 0 : index
    %17 = vector.load %arg4[%c1, %c0_14, %c0_15] : memref<6x64x64xf32, #tpu.memory_space<vmem>>, vector<1x64x64xf32>
    %18 = vector.shape_cast %17 : vector<1x64x64xf32> to vector<64x64xf32>
    %c1_16 = arith.constant 1 : index
    %c0_17 = arith.constant 0 : index
    %c0_18 = arith.constant 0 : index
    %19 = vector.load %arg5[%c1_16, %c0_17, %c0_18] : memref<6x1x64xf32, #tpu.memory_space<vmem>>, vector<1x1x64xf32>
    %20 = vector.shape_cast %19 : vector<1x1x64xf32> to vector<1x64xf32>
    %cst_19 = arith.constant dense<0.000000e+00> : vector<16x64xf32>
    %21 = tpu.matmul %16, %18, %cst_19 {dimension_numbers = #tpu.dot_dimension_numbers<[1], [0], [0], [1], [0, 0, 1, 1], [], []>} : vector<16x64xf32>, vector<64x64xf32>, vector<16x64xf32> -> vector<16x64xf32>
    %22 = vector.broadcast %20 : vector<1x64xf32> to vector<16x64xf32>
    %23 = arith.addf %21, %22 : vector<16x64xf32>
    %cst_20 = arith.constant 0.000000e+00 : f32
    %24 = vector.broadcast %cst_20 : f32 to vector<16x64xf32>
    %25 = arith.maximumf %23, %24 : vector<16x64xf32>
    %c2 = arith.constant 2 : index
    %c0_21 = arith.constant 0 : index
    %c0_22 = arith.constant 0 : index
    %26 = vector.load %arg4[%c2, %c0_21, %c0_22] : memref<6x64x64xf32, #tpu.memory_space<vmem>>, vector<1x64x64xf32>
    %27 = vector.shape_cast %26 : vector<1x64x64xf32> to vector<64x64xf32>
    %c2_23 = arith.constant 2 : index
    %c0_24 = arith.constant 0 : index
    %c0_25 = arith.constant 0 : index
    %28 = vector.load %arg5[%c2_23, %c0_24, %c0_25] : memref<6x1x64xf32, #tpu.memory_space<vmem>>, vector<1x1x64xf32>
    %29 = vector.shape_cast %28 : vector<1x1x64xf32> to vector<1x64xf32>
    %cst_26 = arith.constant dense<0.000000e+00> : vector<16x64xf32>
    %30 = tpu.matmul %25, %27, %cst_26 {dimension_numbers = #tpu.dot_dimension_numbers<[1], [0], [0], [1], [0, 0, 1, 1], [], []>} : vector<16x64xf32>, vector<64x64xf32>, vector<16x64xf32> -> vector<16x64xf32>
    %31 = vector.broadcast %29 : vector<1x64xf32> to vector<16x64xf32>
    %32 = arith.addf %30, %31 : vector<16x64xf32>
    %cst_27 = arith.constant 0.000000e+00 : f32
    %33 = vector.broadcast %cst_27 : f32 to vector<16x64xf32>
    %34 = arith.maximumf %32, %33 : vector<16x64xf32>
    %c3 = arith.constant 3 : index
    %c0_28 = arith.constant 0 : index
    %c0_29 = arith.constant 0 : index
    %35 = vector.load %arg4[%c3, %c0_28, %c0_29] : memref<6x64x64xf32, #tpu.memory_space<vmem>>, vector<1x64x64xf32>
    %36 = vector.shape_cast %35 : vector<1x64x64xf32> to vector<64x64xf32>
    %c3_30 = arith.constant 3 : index
    %c0_31 = arith.constant 0 : index
    %c0_32 = arith.constant 0 : index
    %37 = vector.load %arg5[%c3_30, %c0_31, %c0_32] : memref<6x1x64xf32, #tpu.memory_space<vmem>>, vector<1x1x64xf32>
    %38 = vector.shape_cast %37 : vector<1x1x64xf32> to vector<1x64xf32>
    %cst_33 = arith.constant dense<0.000000e+00> : vector<16x64xf32>
    %39 = tpu.matmul %34, %36, %cst_33 {dimension_numbers = #tpu.dot_dimension_numbers<[1], [0], [0], [1], [0, 0, 1, 1], [], []>} : vector<16x64xf32>, vector<64x64xf32>, vector<16x64xf32> -> vector<16x64xf32>
    %40 = vector.broadcast %38 : vector<1x64xf32> to vector<16x64xf32>
    %41 = arith.addf %39, %40 : vector<16x64xf32>
    %cst_34 = arith.constant 0.000000e+00 : f32
    %42 = vector.broadcast %cst_34 : f32 to vector<16x64xf32>
    %43 = arith.maximumf %41, %42 : vector<16x64xf32>
    %c4 = arith.constant 4 : index
    %c0_35 = arith.constant 0 : index
    %c0_36 = arith.constant 0 : index
    %44 = vector.load %arg4[%c4, %c0_35, %c0_36] : memref<6x64x64xf32, #tpu.memory_space<vmem>>, vector<1x64x64xf32>
    %45 = vector.shape_cast %44 : vector<1x64x64xf32> to vector<64x64xf32>
    %c4_37 = arith.constant 4 : index
    %c0_38 = arith.constant 0 : index
    %c0_39 = arith.constant 0 : index
    %46 = vector.load %arg5[%c4_37, %c0_38, %c0_39] : memref<6x1x64xf32, #tpu.memory_space<vmem>>, vector<1x1x64xf32>
    %47 = vector.shape_cast %46 : vector<1x1x64xf32> to vector<1x64xf32>
    %cst_40 = arith.constant dense<0.000000e+00> : vector<16x64xf32>
    %48 = tpu.matmul %43, %45, %cst_40 {dimension_numbers = #tpu.dot_dimension_numbers<[1], [0], [0], [1], [0, 0, 1, 1], [], []>} : vector<16x64xf32>, vector<64x64xf32>, vector<16x64xf32> -> vector<16x64xf32>
    %49 = vector.broadcast %47 : vector<1x64xf32> to vector<16x64xf32>
    %50 = arith.addf %48, %49 : vector<16x64xf32>
    %cst_41 = arith.constant 0.000000e+00 : f32
    %51 = vector.broadcast %cst_41 : f32 to vector<16x64xf32>
    %52 = arith.maximumf %50, %51 : vector<16x64xf32>
    %c5 = arith.constant 5 : index
    %c0_42 = arith.constant 0 : index
    %c0_43 = arith.constant 0 : index
    %53 = vector.load %arg4[%c5, %c0_42, %c0_43] : memref<6x64x64xf32, #tpu.memory_space<vmem>>, vector<1x64x64xf32>
    %54 = vector.shape_cast %53 : vector<1x64x64xf32> to vector<64x64xf32>
    %c5_44 = arith.constant 5 : index
    %c0_45 = arith.constant 0 : index
    %c0_46 = arith.constant 0 : index
    %55 = vector.load %arg5[%c5_44, %c0_45, %c0_46] : memref<6x1x64xf32, #tpu.memory_space<vmem>>, vector<1x1x64xf32>
    %56 = vector.shape_cast %55 : vector<1x1x64xf32> to vector<1x64xf32>
    %cst_47 = arith.constant dense<0.000000e+00> : vector<16x64xf32>
    %57 = tpu.matmul %52, %54, %cst_47 {dimension_numbers = #tpu.dot_dimension_numbers<[1], [0], [0], [1], [0, 0, 1, 1], [], []>} : vector<16x64xf32>, vector<64x64xf32>, vector<16x64xf32> -> vector<16x64xf32>
    %58 = vector.broadcast %56 : vector<1x64xf32> to vector<16x64xf32>
    %59 = arith.addf %57, %58 : vector<16x64xf32>
    %60 = math.tanh %59 : vector<16x64xf32>
    %c0_48 = arith.constant 0 : index
    %c0_49 = arith.constant 0 : index
    %61 = vector.load %arg6[%c0_48, %c0_49] : memref<64x8xf32, #tpu.memory_space<vmem>>, vector<64x8xf32>
    %c0_50 = arith.constant 0 : index
    %c0_51 = arith.constant 0 : index
    %62 = vector.load %arg7[%c0_50, %c0_51] : memref<1x8xf32, #tpu.memory_space<vmem>>, vector<1x8xf32>
    %cst_52 = arith.constant dense<0.000000e+00> : vector<16x8xf32>
    %63 = tpu.matmul %60, %61, %cst_52 {dimension_numbers = #tpu.dot_dimension_numbers<[1], [0], [0], [1], [0, 0, 1, 1], [], []>} : vector<16x64xf32>, vector<64x8xf32>, vector<16x8xf32> -> vector<16x8xf32>
    %64 = vector.broadcast %62 : vector<1x8xf32> to vector<16x8xf32>
    %65 = arith.addf %63, %64 : vector<16x8xf32>
    %c0_53 = arith.constant 0 : index
    %c0_54 = arith.constant 0 : index
    %66 = vector.load %arg8[%c0_53, %c0_54] : memref<16x8xf32, #tpu.memory_space<vmem>>, vector<16x8xf32>
    tpu.vector_store %arg8[%c0_53, %c0_54], %65 {strides = array<i32>} : memref<16x8xf32, #tpu.memory_space<vmem>>, vector<16x8xf32>,
    return
  }
  func.func @transform_0(%arg0: i32) -> (i32, i32) {
    %c0_i32 = arith.constant 0 : i32
    %c0_i32_0 = arith.constant 0 : i32
    return %arg0, %c0_i32 : i32, i32
  }
  func.func @transform_1(%arg0: i32) -> (i32, i32) {
    %c0_i32 = arith.constant 0 : i32
    %c0_i32_0 = arith.constant 0 : i32
    %c0_i32_1 = arith.constant 0 : i32
    return %c0_i32, %c0_i32_0 : i32, i32
  }
  func.func @transform_2(%arg0: i32) -> (i32, i32) {
    %c0_i32 = arith.constant 0 : i32
    %c0_i32_0 = arith.constant 0 : i32
    %c0_i32_1 = arith.constant 0 : i32
    return %c0_i32, %c0_i32_0 : i32, i32
  }
  func.func @transform_3(%arg0: i32) -> (i32, i32, i32) {
    %c0_i32 = arith.constant 0 : i32
    %c0_i32_0 = arith.constant 0 : i32
    %c0_i32_1 = arith.constant 0 : i32
    %c0_i32_2 = arith.constant 0 : i32
    return %c0_i32, %c0_i32_0, %c0_i32_1 : i32, i32, i32
  }
  func.func @transform_4(%arg0: i32) -> (i32, i32, i32) {
    %c0_i32 = arith.constant 0 : i32
    %c0_i32_0 = arith.constant 0 : i32
    %c0_i32_1 = arith.constant 0 : i32
    %c0_i32_2 = arith.constant 0 : i32
    return %c0_i32, %c0_i32_0, %c0_i32_1 : i32, i32, i32
  }
  func.func @transform_5(%arg0: i32) -> (i32, i32) {
    %c0_i32 = arith.constant 0 : i32
    %c0_i32_0 = arith.constant 0 : i32
    %c0_i32_1 = arith.constant 0 : i32
    return %c0_i32, %c0_i32_0 : i32, i32
  }
  func.func @transform_6(%arg0: i32) -> (i32, i32) {
    %c0_i32 = arith.constant 0 : i32
    %c0_i32_0 = arith.constant 0 : i32
    %c0_i32_1 = arith.constant 0 : i32
    return %c0_i32, %c0_i32_0 : i32, i32
  }
  func.func @transform_7(%arg0: i32) -> (i32, i32) {
    %c0_i32 = arith.constant 0 : i32
    %c0_i32_0 = arith.constant 0 : i32
    return %arg0, %c0_i32 : i32, i32
  }
}

module attributes {stable_mosaic.version = 11 : i64} {
  func.func @_mlp_kernel(%arg0: i32, %arg1: memref<16x32xf32, #tpu.memory_space<vmem>>, %arg2: memref<32x64xf32, #tpu.memory_space<vmem>>, %arg3: memref<1x64xf32, #tpu.memory_space<vmem>>, %arg4: memref<6x64x64xf32, #tpu.memory_space<vmem>>, %arg5: memref<6x1x64xf32, #tpu.memory_space<vmem>>, %arg6: memref<64x8xf32, #tpu.memory_space<vmem>>, %arg7: memref<1x8xf32, #tpu.memory_space<vmem>>, %arg8: memref<16x8xf32, #tpu.memory_space<vmem>>) attributes {dimension_semantics = [#tpu.dimension_semantics<parallel>], iteration_bounds = array<i64: 1>, scalar_prefetch = 0 : i64, scratch_operands = 0 : i64, tpu.core_type = #tpu.core_type<tc>, window_params = [{transform_indices = @transform_0, window_bounds = array<i64: 16, 32>}, {pipeline_mode = #tpu.pipeline_mode<synchronous>, transform_indices = @transform_1, window_bounds = array<i64: 32, 64>}, {pipeline_mode = #tpu.pipeline_mode<synchronous>, transform_indices = @transform_2, window_bounds = array<i64: 1, 64>}, {pipeline_mode = #tpu.pipeline_mode<synchronous>, transform_indices = @transform_3, window_bounds = array<i64: 6, 64, 64>}, {pipeline_mode = #tpu.pipeline_mode<synchronous>, transform_indices = @transform_4, window_bounds = array<i64: 6, 1, 64>}, {pipeline_mode = #tpu.pipeline_mode<synchronous>, transform_indices = @transform_5, window_bounds = array<i64: 64, 8>}, {pipeline_mode = #tpu.pipeline_mode<synchronous>, transform_indices = @transform_6, window_bounds = array<i64: 1, 8>}, {transform_indices = @transform_7, window_bounds = array<i64: 16, 8>}]} {
    %c0 = arith.constant 0 : index
    %c0_0 = arith.constant 0 : index
    %0 = vector.load %arg1[%c0, %c0_0] : memref<16x32xf32, #tpu.memory_space<vmem>>, vector<16x32xf32>
    %c0_1 = arith.constant 0 : index
    %c0_2 = arith.constant 0 : index
    %1 = vector.load %arg2[%c0_1, %c0_2] : memref<32x64xf32, #tpu.memory_space<vmem>>, vector<32x64xf32>
    %c0_3 = arith.constant 0 : index
    %c0_4 = arith.constant 0 : index
    %2 = vector.load %arg3[%c0_3, %c0_4] : memref<1x64xf32, #tpu.memory_space<vmem>>, vector<1x64xf32>
    %cst = arith.constant dense<0.000000e+00> : vector<16x64xf32>
    %3 = tpu.matmul %0, %1, %cst {dimension_numbers = #tpu.dot_dimension_numbers<[1], [0], [0], [1], [0, 0, 1, 1], [], []>} : vector<16x32xf32>, vector<32x64xf32>, vector<16x64xf32> -> vector<16x64xf32>
    %4 = vector.broadcast %2 : vector<1x64xf32> to vector<16x64xf32>
    %5 = arith.addf %3, %4 : vector<16x64xf32>
    %cst_5 = arith.constant 0.000000e+00 : f32
    %6 = vector.broadcast %cst_5 : f32 to vector<16x64xf32>
    %7 = arith.maximumf %5, %6 : vector<16x64xf32>
    %c0_6 = arith.constant 0 : index
    %c0_7 = arith.constant 0 : index
    %c0_8 = arith.constant 0 : index
    %8 = vector.load %arg4[%c0_6, %c0_7, %c0_8] : memref<6x64x64xf32, #tpu.memory_space<vmem>>, vector<1x64x64xf32>
    %9 = vector.shape_cast %8 : vector<1x64x64xf32> to vector<64x64xf32>
    %c0_9 = arith.constant 0 : index
    %c0_10 = arith.constant 0 : index
    %c0_11 = arith.constant 0 : index
    %10 = vector.load %arg5[%c0_9, %c0_10, %c0_11] : memref<6x1x64xf32, #tpu.memory_space<vmem>>, vector<1x1x64xf32>
    %11 = vector.shape_cast %10 : vector<1x1x64xf32> to vector<1x64xf32>
    %cst_12 = arith.constant dense<0.000000e+00> : vector<16x64xf32>
    %12 = tpu.matmul %7, %9, %cst_12 {dimension_numbers = #tpu.dot_dimension_numbers<[1], [0], [0], [1], [0, 0, 1, 1], [], []>} : vector<16x64xf32>, vector<64x64xf32>, vector<16x64xf32> -> vector<16x64xf32>
    %13 = vector.broadcast %11 : vector<1x64xf32> to vector<16x64xf32>
    %14 = arith.addf %12, %13 : vector<16x64xf32>
    %cst_13 = arith.constant 0.000000e+00 : f32
    %15 = vector.broadcast %cst_13 : f32 to vector<16x64xf32>
    %16 = arith.maximumf %14, %15 : vector<16x64xf32>
    %c1 = arith.constant 1 : index
    %c0_14 = arith.constant 0 : index
    %c0_15 = arith.constant 0 : index
    %17 = vector.load %arg4[%c1, %c0_14, %c0_15] : memref<6x64x64xf32, #tpu.memory_space<vmem>>, vector<1x64x64xf32>
    %18 = vector.shape_cast %17 : vector<1x64x64xf32> to vector<64x64xf32>
    %c1_16 = arith.constant 1 : index
    %c0_17 = arith.constant 0 : index
    %c0_18 = arith.constant 0 : index
    %19 = vector.load %arg5[%c1_16, %c0_17, %c0_18] : memref<6x1x64xf32, #tpu.memory_space<vmem>>, vector<1x1x64xf32>
    %20 = vector.shape_cast %19 : vector<1x1x64xf32> to vector<1x64xf32>
    %cst_19 = arith.constant dense<0.000000e+00> : vector<16x64xf32>
    %21 = tpu.matmul %16, %18, %cst_19 {dimension_numbers = #tpu.dot_dimension_numbers<[1], [0], [0], [1], [0, 0, 1, 1], [], []>} : vector<16x64xf32>, vector<64x64xf32>, vector<16x64xf32> -> vector<16x64xf32>
    %22 = vector.broadcast %20 : vector<1x64xf32> to vector<16x64xf32>
    %23 = arith.addf %21, %22 : vector<16x64xf32>
    %cst_20 = arith.constant 0.000000e+00 : f32
    %24 = vector.broadcast %cst_20 : f32 to vector<16x64xf32>
    %25 = arith.maximumf %23, %24 : vector<16x64xf32>
    %c2 = arith.constant 2 : index
    %c0_21 = arith.constant 0 : index
    %c0_22 = arith.constant 0 : index
    %26 = vector.load %arg4[%c2, %c0_21, %c0_22] : memref<6x64x64xf32, #tpu.memory_space<vmem>>, vector<1x64x64xf32>
    %27 = vector.shape_cast %26 : vector<1x64x64xf32> to vector<64x64xf32>
    %c2_23 = arith.constant 2 : index
    %c0_24 = arith.constant 0 : index
    %c0_25 = arith.constant 0 : index
    %28 = vector.load %arg5[%c2_23, %c0_24, %c0_25] : memref<6x1x64xf32, #tpu.memory_space<vmem>>, vector<1x1x64xf32>
    %29 = vector.shape_cast %28 : vector<1x1x64xf32> to vector<1x64xf32>
    %cst_26 = arith.constant dense<0.000000e+00> : vector<16x64xf32>
    %30 = tpu.matmul %25, %27, %cst_26 {dimension_numbers = #tpu.dot_dimension_numbers<[1], [0], [0], [1], [0, 0, 1, 1], [], []>} : vector<16x64xf32>, vector<64x64xf32>, vector<16x64xf32> -> vector<16x64xf32>
    %31 = vector.broadcast %29 : vector<1x64xf32> to vector<16x64xf32>
    %32 = arith.addf %30, %31 : vector<16x64xf32>
    %cst_27 = arith.constant 0.000000e+00 : f32
    %33 = vector.broadcast %cst_27 : f32 to vector<16x64xf32>
    %34 = arith.maximumf %32, %33 : vector<16x64xf32>
    %c3 = arith.constant 3 : index
    %c0_28 = arith.constant 0 : index
    %c0_29 = arith.constant 0 : index
    %35 = vector.load %arg4[%c3, %c0_28, %c0_29] : memref<6x64x64xf32, #tpu.memory_space<vmem>>, vector<1x64x64xf32>
    %36 = vector.shape_cast %35 : vector<1x64x64xf32> to vector<64x64xf32>
    %c3_30 = arith.constant 3 : index
    %c0_31 = arith.constant 0 : index
    %c0_32 = arith.constant 0 : index
    %37 = vector.load %arg5[%c3_30, %c0_31, %c0_32] : memref<6x1x64xf32, #tpu.memory_space<vmem>>, vector<1x1x64xf32>
    %38 = vector.shape_cast %37 : vector<1x1x64xf32> to vector<1x64xf32>
    %cst_33 = arith.constant dense<0.000000e+00> : vector<16x64xf32>
    %39 = tpu.matmul %34, %36, %cst_33 {dimension_numbers = #tpu.dot_dimension_numbers<[1], [0], [0], [1], [0, 0, 1, 1], [], []>} : vector<16x64xf32>, vector<64x64xf32>, vector<16x64xf32> -> vector<16x64xf32>
    %40 = vector.broadcast %38 : vector<1x64xf32> to vector<16x64xf32>
    %41 = arith.addf %39, %40 : vector<16x64xf32>
    %cst_34 = arith.constant 0.000000e+00 : f32
    %42 = vector.broadcast %cst_34 : f32 to vector<16x64xf32>
    %43 = arith.maximumf %41, %42 : vector<16x64xf32>
    %c4 = arith.constant 4 : index
    %c0_35 = arith.constant 0 : index
    %c0_36 = arith.constant 0 : index
    %44 = vector.load %arg4[%c4, %c0_35, %c0_36] : memref<6x64x64xf32, #tpu.memory_space<vmem>>, vector<1x64x64xf32>
    %45 = vector.shape_cast %44 : vector<1x64x64xf32> to vector<64x64xf32>
    %c4_37 = arith.constant 4 : index
    %c0_38 = arith.constant 0 : index
    %c0_39 = arith.constant 0 : index
    %46 = vector.load %arg5[%c4_37, %c0_38, %c0_39] : memref<6x1x64xf32, #tpu.memory_space<vmem>>, vector<1x1x64xf32>
    %47 = vector.shape_cast %46 : vector<1x1x64xf32> to vector<1x64xf32>
    %cst_40 = arith.constant dense<0.000000e+00> : vector<16x64xf32>
    %48 = tpu.matmul %43, %45, %cst_40 {dimension_numbers = #tpu.dot_dimension_numbers<[1], [0], [0], [1], [0, 0, 1, 1], [], []>} : vector<16x64xf32>, vector<64x64xf32>, vector<16x64xf32> -> vector<16x64xf32>
    %49 = vector.broadcast %47 : vector<1x64xf32> to vector<16x64xf32>
    %50 = arith.addf %48, %49 : vector<16x64xf32>
    %cst_41 = arith.constant 0.000000e+00 : f32
    %51 = vector.broadcast %cst_41 : f32 to vector<16x64xf32>
    %52 = arith.maximumf %50, %51 : vector<16x64xf32>
    %c5 = arith.constant 5 : index
    %c0_42 = arith.constant 0 : index
    %c0_43 = arith.constant 0 : index
    %53 = vector.load %arg4[%c5, %c0_42, %c0_43] : memref<6x64x64xf32, #tpu.memory_space<vmem>>, vector<1x64x64xf32>
    %54 = vector.shape_cast %53 : vector<1x64x64xf32> to vector<64x64xf32>
    %c5_44 = arith.constant 5 : index
    %c0_45 = arith.constant 0 : index
    %c0_46 = arith.constant 0 : index
    %55 = vector.load %arg5[%c5_44, %c0_45, %c0_46] : memref<6x1x64xf32, #tpu.memory_space<vmem>>, vector<1x1x64xf32>
    %56 = vector.shape_cast %55 : vector<1x1x64xf32> to vector<1x64xf32>
    %cst_47 = arith.constant dense<0.000000e+00> : vector<16x64xf32>
    %57 = tpu.matmul %52, %54, %cst_47 {dimension_numbers = #tpu.dot_dimension_numbers<[1], [0], [0], [1], [0, 0, 1, 1], [], []>} : vector<16x64xf32>, vector<64x64xf32>, vector<16x64xf32> -> vector<16x64xf32>
    %58 = vector.broadcast %56 : vector<1x64xf32> to vector<16x64xf32>
    %59 = arith.addf %57, %58 : vector<16x64xf32>
    %60 = math.tanh %59 : vector<16x64xf32>
    %c0_48 = arith.constant 0 : index
    %c0_49 = arith.constant 0 : index
    %61 = vector.load %arg6[%c0_48, %c0_49] : memref<64x8xf32, #tpu.memory_space<vmem>>, vector<64x8xf32>
    %c0_50 = arith.constant 0 : index
    %c0_51 = arith.constant 0 : index
    %62 = vector.load %arg7[%c0_50, %c0_51] : memref<1x8xf32, #tpu.memory_space<vmem>>, vector<1x8xf32>
    %cst_52 = arith.constant dense<0.000000e+00> : vector<16x8xf32>
    %63 = tpu.matmul %60, %61, %cst_52 {dimension_numbers = #tpu.dot_dimension_numbers<[1], [0], [0], [1], [0, 0, 1, 1], [], []>} : vector<16x64xf32>, vector<64x8xf32>, vector<16x8xf32> -> vector<16x8xf32>
    %64 = vector.broadcast %62 : vector<1x8xf32> to vector<16x8xf32>
    %65 = arith.addf %63, %64 : vector<16x8xf32>
    %c0_53 = arith.constant 0 : index
    %c0_54 = arith.constant 0 : index
    %66 = vector.load %arg8[%c0_53, %c0_54] : memref<16x8xf32, #tpu.memory_space<vmem>>, vector<16x8xf32>
    tpu.vector_store %arg8[%c0_53, %c0_54], %65 {strides = array<i32>} : memref<16x8xf32, #tpu.memory_space<vmem>>, vector<16x8xf32>,
    return
  }
  func.func @transform_0(%arg0: i32) -> (i32, i32) {
    %c0_i32 = arith.constant 0 : i32
    %c0_i32_0 = arith.constant 0 : i32
    return %arg0, %c0_i32 : i32, i32
  }
  func.func @transform_1(%arg0: i32) -> (i32, i32) {
    %c0_i32 = arith.constant 0 : i32
    %c0_i32_0 = arith.constant 0 : i32
    %c0_i32_1 = arith.constant 0 : i32
    return %c0_i32, %c0_i32_0 : i32, i32
  }
  func.func @transform_2(%arg0: i32) -> (i32, i32) {
    %c0_i32 = arith.constant 0 : i32
    %c0_i32_0 = arith.constant 0 : i32
    %c0_i32_1 = arith.constant 0 : i32
    return %c0_i32, %c0_i32_0 : i32, i32
  }
  func.func @transform_3(%arg0: i32) -> (i32, i32, i32) {
    %c0_i32 = arith.constant 0 : i32
    %c0_i32_0 = arith.constant 0 : i32
    %c0_i32_1 = arith.constant 0 : i32
    %c0_i32_2 = arith.constant 0 : i32
    return %c0_i32, %c0_i32_0, %c0_i32_1 : i32, i32, i32
  }
  func.func @transform_4(%arg0: i32) -> (i32, i32, i32) {
    %c0_i32 = arith.constant 0 : i32
    %c0_i32_0 = arith.constant 0 : i32
    %c0_i32_1 = arith.constant 0 : i32
    %c0_i32_2 = arith.constant 0 : i32
    return %c0_i32, %c0_i32_0, %c0_i32_1 : i32, i32, i32
  }
  func.func @transform_5(%arg0: i32) -> (i32, i32) {
    %c0_i32 = arith.constant 0 : i32
    %c0_i32_0 = arith.constant 0 : i32
    %c0_i32_1 = arith.constant 0 : i32
    return %c0_i32, %c0_i32_0 : i32, i32
  }
  func.func @transform_6(%arg0: i32) -> (i32, i32) {
    %c0_i32 = arith.constant 0 : i32
    %c0_i32_0 = arith.constant 0 : i32
    %c0_i32_1 = arith.constant 0 : i32
    return %c0_i32, %c0_i32_0 : i32, i32
  }
  func.func @transform_7(%arg0: i32) -> (i32, i32) {
    %c0_i32 = arith.constant 0 : i32
    %c0_i32_0 = arith.constant 0 : i32
    return %arg0, %c0_i32 : i32, i32
  }
}

</mosaic_0001>

<bundles_post_ra>
// kernel: tpu_custom_call.1
= control target key start
LH: loop header
LB: loop body
LE: loop exit
PB: predicated region body
PF: predicated region fallthrough
CT: control target
= control target key end

     0   :  { %12 = vsyncpa [#allocation3], 0  ;;  %s1118_s24 = smov [#allocation2]   ;;  %s1252_s0 = inlined_call_operand.vmem [shape: f32[16,32], index: 0, kind: input, shape index: {}]   ;;  %s1253_s1 = inlined_call_operand.vmem [shape: f32[32,64], index: 1, kind: input, shape index: {}]   ;;  %s1254_s2 = inlined_call_operand.vmem [shape: f32[1,64], index: 2, kind: input, shape index: {}]   ;;  %s1255_s3 = inlined_call_operand.hbm [shape: f32[6,64,64], index: 3, kind: input, shape index: {}]   ;;  %s1256_s4 = inlined_call_operand.vmem [shape: f32[6,1,64], index: 4, kind: input, shape index: {}]   ;;  %s1257_s5 = inlined_call_operand.vmem [shape: f32[64,8], index: 5, kind: input, shape index: {}]   ;;  %s1258_s6 = inlined_call_operand.vmem [shape: f32[1,8], index: 6, kind: input, shape index: {}]   ;;  %s1259_s7 = inlined_call_operand.vmem [shape: f32[16,8], index: 7, kind: output, shape index: {}]  }
   0x1   :  { %s24_s25 = sshll.u32 %s1118_s24, 4  ;;  %s25_s25 = int_to_ptr.vmem [resolvable:$true] %s24_s25 }
   0x2   :  { %s1104_s26 = scalar_lea.vmem %s25_s25, 6144  ;;  %p1109_p1 = scmp.lt.s32.totalorder %s25_s25, %s25_s25 }
   0x3   :  { %p1105_p0 = scmp.ne.s32.totalorder %s25_s25, %s1104_s26  ;;  %p1110_p2 = scmp.lt.s32.totalorder %s1104_s26, %s1104_s26 }
   0x5   :  { %p1111_p3 = por %p1110_p2, %p1109_p1 }
   0x7   :  { %p1112_p4 = pnand %p1111_p3, %p1105_p0 }
   0x9   :  { %1115 = shalt.err (!%p1112_p4)
}
   0xa   :  { %s1119_s27 = smov 128   ;;  %s1120_s28 = smov 8  }
   0xb   :  { %30 = dma.hbm_to_vmem [thread:$0]  %s1255_s3, 6144, %s25_s25, [#allocation3], %s1119_s27, %s1119_s27, %s1120_s28  }
   0xc   :  { %1116 = dma.done.wait [#allocation3], 6144  }
   0xd   :  { %1117 = vsyncadd [#allocation3], 4294961152  ;;  %vm53_vm0 = vcmask 261120   ;;  %v45_v0 = vld [vmem:[%s1253_s1 + $0x18] sm:$0xff]  ;;  %v44_v1 = vld [vmem:[%s1253_s1 + $0x10] sm:$0xff]  ;;  %vm152_vm1 = vcmask 523264  }
   0xe   :  { %945 = vmatprep.subr.mxu0 %v45_v0  ;;  %v40_v2 = vld [vmem:[%s1252_s0] sm:$0xff]  ;;  %v43_v3 = vld [vmem:[%s1253_s1 + $0x8] sm:$0xff]  ;;  %v144_v4 = vld [vmem:[#allocation2 + $0x38] sm:$0xff]  ;;  %vm832_vm2 = vcmask 64512  }
   0xf   :  { %946 = vmatpush3.msra.mxu0 %v45_v0  ;;  %953 = vmatprep.mubr.msk.f32.mxu0 %vm53_vm0, %v40_v2  ;;  %v143_v5 = vld [vmem:[#allocation2 + $0x30] sm:$0xff]  ;;  %v42_v6 = vld [vmem:[%s1253_s1] sm:$0xff]  ;;  %v142_v7 = vld [vmem:[#allocation2 + $0x28] sm:$0xff] }
  0x10   :  { %947 = vmatprep.subr.mxu0 %v44_v1  ;;  %956 = vmatprep.subr.mxu1 %v144_v4  ;;  %v41_v8 = vld [vmem:[%s1252_s0 + $0x8] sm:$0xff]  ;;  %v141_v9 = vld [vmem:[#allocation2 + $0x20] sm:$0xff]  ;;  %v140_v10 = vld [vmem:[#allocation2 + $0x18] sm:$0xff] }
  0x11   :  { %948 = vmatpush3.msra.mxu0 %v44_v1  ;;  %957 = vmatpush3.msra.mxu1 %v144_v4  ;;  %v139_v11 = vld [vmem:[#allocation2 + $0x10] sm:$0xff]  ;;  %v138_v12 = vld [vmem:[#allocation2 + $0x8] sm:$0xff]  ;;  %v137_v13 = vld [vmem:[#allocation2] sm:$0xff] }
  0x12   :  { %949 = vmatprep.subr.mxu0 %v43_v3  ;;  %958 = vmatprep.subr.mxu1 %v143_v5  ;;  %v244_v14 = vld [vmem:[#allocation2 + $0x78] sm:$0xff]  ;;  %v243_v15 = vld [vmem:[#allocation2 + $0x70] sm:$0xff]  ;;  %v242_v16 = vld [vmem:[#allocation2 + $0x68] sm:$0xff] }
  0x13   :  { %950 = vmatpush3.msra.mxu0 %v43_v3  ;;  %959 = vmatpush3.msra.mxu1 %v143_v5  ;;  %v241_v17 = vld [vmem:[#allocation2 + $0x60] sm:$0xff]  ;;  %v240_v25 = vld [vmem:[#allocation2 + $0x58] sm:$0xff]  ;;  %v239_v26 = vld [vmem:[#allocation2 + $0x50] sm:$0xff] }
  0x14   :  { %951 = vmatprep.subr.mxu0 %v42_v6  ;;  %960 = vmatprep.subr.mxu1 %v142_v7  ;;  %v840_v18 = vld [vmem:[%s1254_s2] ss:$0 sm:$0xff]  ;;  %v238_v27 = vld [vmem:[#allocation2 + $0x48] sm:$0xff]  ;;  %v344_v29 = vld [vmem:[#allocation2 + $0xb8] sm:$0xff] }
  0x15   :  { %952 = vmatpush3.msra.mxu0 %v42_v6  ;;  %961 = vmatpush3.msra.mxu1 %v142_v7  ;;  %v237_v28 = vld [vmem:[#allocation2 + $0x40] sm:$0xff]  ;;  %v343_v30 = vld [vmem:[#allocation2 + $0xb0] sm:$0xff]  ;;  %v342_v31 = vld [vmem:[#allocation2 + $0xa8] sm:$0xff] }
  0x16   :  { %954 = vmatmul.mubr.msk.f32.vlgmr.msra.gmra.mxu0 %vm53_vm0, %v41_v8  ;;  %962 = vmatprep.subr.mxu1 %v141_v9  ;;  %v341_v32 = vld [vmem:[#allocation2 + $0xa0] sm:$0xff]  ;;  %v340_v40 = vld [vmem:[#allocation2 + $0x98] sm:$0xff]  ;;  %v339_v41 = vld [vmem:[#allocation2 + $0x90] sm:$0xff] }
  0x17   :  { %963 = vmatpush3.msra.mxu1 %v141_v9  ;;  %975 = vmatprep.subr.mxu0 %v244_v14  ;;  %v843_v33 = vld [vmem:[%s1256_s4] ss:$0 sm:$0xff]  ;;  %v338_v42 = vld [vmem:[#allocation2 + $0x88] sm:$0xff]  ;;  %v444_v44 = vld [vmem:[#allocation2 + $0xf8] sm:$0xff] }
  0x18   :  { %964 = vmatprep.subr.mxu1 %v140_v10  ;;  %976 = vmatpush3.msra.mxu0 %v244_v14  ;;  %v337_v43 = vld [vmem:[#allocation2 + $0x80] sm:$0xff]  ;;  %v443_v45 = vld [vmem:[#allocation2 + $0xf0] sm:$0xff]  ;;  %v442_v46 = vld [vmem:[#allocation2 + $0xe8] sm:$0xff] }
  0x19   :  { %965 = vmatpush3.msra.mxu1 %v140_v10  ;;  %977 = vmatprep.subr.mxu0 %v243_v15  ;;  %v441_v47 = vld [vmem:[#allocation2 + $0xe0] sm:$0xff]  ;;  %v440_v55 = vld [vmem:[#allocation2 + $0xd8] sm:$0xff]  ;;  %v439_v56 = vld [vmem:[#allocation2 + $0xd0] sm:$0xff] }
  0x1a   :  { %966 = vmatprep.subr.mxu1 %v139_v11  ;;  %978 = vmatpush3.msra.mxu0 %v243_v15  ;;  %v847_v48 = vld [vmem:[%s1256_s4 + $0x1] ss:$0 sm:$0xff]  ;;  %v438_v57 = vld [vmem:[#allocation2 + $0xc8] sm:$0xff]  ;;  %v544_v59 = vld [vmem:[#allocation2 + $0x138] sm:$0xff] }
  0x1b   :  { %967 = vmatpush3.msra.mxu1 %v139_v11  ;;  %979 = vmatprep.subr.mxu0 %v242_v16  ;;  %v437_v58 = vld [vmem:[#allocation2 + $0xc0] sm:$0xff]  ;;  %v543_v60 = vld [vmem:[#allocation2 + $0x130] sm:$0xff]  ;;  %v542_v61 = vld [vmem:[#allocation2 + $0x128] sm:$0xff] }
  0x1c   :  { %968 = vmatprep.subr.mxu1 %v138_v12  ;;  %980 = vmatpush3.msra.mxu0 %v242_v16  ;;  %v541_v62 = vld [vmem:[#allocation2 + $0x120] sm:$0xff]  ;;  %v540_v6 = vld [vmem:[#allocation2 + $0x118] sm:$0xff]  ;;  %v539_v7 = vld [vmem:[#allocation2 + $0x110] sm:$0xff] }
  0x1d   :  { %969 = vmatpush3.msra.mxu1 %v138_v12  ;;  %981 = vmatprep.subr.mxu0 %v241_v17  ;;  %v851_v63 = vld [vmem:[%s1256_s4 + $0x2] ss:$0 sm:$0xff]  ;;  %v538_v8 = vld [vmem:[#allocation2 + $0x108] sm:$0xff]  ;;  %v644_v10 = vld [vmem:[#allocation2 + $0x178] sm:$0xff] }
  0x1e   :  { %970 = vmatprep.subr.mxu1 %v137_v13  ;;  %982 = vmatpush3.msra.mxu0 %v241_v17  ;;  %v537_v9 = vld [vmem:[#allocation2 + $0x100] sm:$0xff]  ;;  %v643_v11 = vld [vmem:[#allocation2 + $0x170] sm:$0xff]  ;;  %v642_v12 = vld [vmem:[#allocation2 + $0x168] sm:$0xff] }
  0x1f   :  { %971 = vmatpush3.msra.mxu1 %v137_v13  ;;  %983 = vmatprep.subr.mxu0 %v240_v25  ;;  %v641_v13 = vld [vmem:[#allocation2 + $0x160] sm:$0xff] }
  0x20   :  { %984 = vmatpush3.msra.mxu0 %v240_v25  ;;  %994 = vmatprep.subr.mxu1 %v344_v29  ;;  %v855_v14 = vld [vmem:[%s1256_s4 + $0x3] ss:$0 sm:$0xff]  ;;  %v859_v25 = vld [vmem:[%s1256_s4 + $0x4] ss:$0 sm:$0xff] }
  0x21   :  { %985 = vmatprep.subr.mxu0 %v239_v26 }
  0x22   :  { %986 = vmatpush3.msra.mxu0 %v239_v26 }
  0x23   :  { %987 = vmatprep.subr.mxu0 %v238_v27 }
  0x24   :  { %988 = vmatpush3.msra.mxu0 %v238_v27 }
  0x25   :  { %989 = vmatprep.subr.mxu0 %v237_v28 }
  0x26   :  { %990 = vmatpush3.msra.mxu0 %v237_v28 }
  0x27   :  { %1013 = vmatprep.subr.mxu0 %v444_v44 }
  0xd6   :  { %v955_v19 = vpop.f32.mrf.mxu0 }
  0xd7   :  { %v132_v20 = vadd.f32 %v955_v19, %v840_v18 }
  0xd8   :  { %v126_v21 = vpop.f32.mrf.mxu0 }
  0xd9   :  { %v127_v22 = vadd.f32 %v840_v18, %v126_v21  ;;  %v136_v24 = vmax.f32 %v132_v20, 0.0  ;;  %v640_v21 = vld [vmem:[#allocation2 + $0x158] sm:$0xff] }
  0xdb   :  { %v135_v23 = vmax.f32 %v127_v22, 0.0  ;;  %v639_v22 = vld [vmem:[#allocation2 + $0x150] sm:$0xff] }
  0xdd   :  { %972 = vmatprep.mubr.msk.f32.mxu1 %vm152_vm1, %v135_v23  ;;  %v638_v23 = vld [vmem:[#allocation2 + $0x148] sm:$0xff] }
  0xde   :  { %973 = vmatmul.mubr.msk.f32.vlgmr.msra.gmra.mxu1 %vm152_vm1, %v136_v24  ;;  %v637_v24 = vld [vmem:[#allocation2 + $0x140] sm:$0xff] }
  0xdf   :  { %995 = vmatpush3.msra.mxu1 %v344_v29 }
  0xe0   :  { %996 = vmatprep.subr.mxu1 %v343_v30 }
  0xe1   :  { %997 = vmatpush3.msra.mxu1 %v343_v30 }
  0xe2   :  { %998 = vmatprep.subr.mxu1 %v342_v31 }
  0xe3   :  { %999 = vmatpush3.msra.mxu1 %v342_v31 }
  0xe4   :  { %1000 = vmatprep.subr.mxu1 %v341_v32 }
  0xe5   :  { %1001 = vmatpush3.msra.mxu1 %v341_v32  ;;  %v743_v32 = vld [vmem:[%s1257_s5 + $0x38] sm:$0xff] }
  0xe6   :  { %1002 = vmatprep.subr.mxu1 %v340_v40 }
  0xe7   :  { %1003 = vmatpush3.msra.mxu1 %v340_v40  ;;  %v863_v40 = vld [vmem:[%s1256_s4 + $0x5] ss:$0 sm:$0xff] }
  0xe8   :  { %1004 = vmatprep.subr.mxu1 %v339_v41 }
  0xe9   :  { %1005 = vmatpush3.msra.mxu1 %v339_v41 }
  0xea   :  { %1006 = vmatprep.subr.mxu1 %v338_v42 }
  0xeb   :  { %1007 = vmatpush3.msra.mxu1 %v338_v42 }
  0xec   :  { %1008 = vmatprep.subr.mxu1 %v337_v43 }
  0xed   :  { %1009 = vmatpush3.msra.mxu1 %v337_v43 }
  0xee   :  { %1032 = vmatprep.subr.mxu1 %v544_v59 }
 0x19e   :  { %v974_v34 = vpop.f32.mrf.mxu1 }
 0x19f   :  { %v231_v35 = vadd.f32 %v974_v34, %v843_v33  ;;  %v741_v34 = vld [vmem:[%s1257_s5 + $0x28] sm:$0xff] }
 0x1a0   :  { %v225_v36 = vpop.f32.mrf.mxu1 }
 0x1a1   :  { %v226_v37 = vadd.f32 %v843_v33, %v225_v36  ;;  %v235_v39 = vmax.f32 %v231_v35, 0.0  ;;  %v742_v33 = vld [vmem:[%s1257_s5 + $0x30] sm:$0xff]  ;;  %v740_v35 = vld [vmem:[%s1257_s5 + $0x20] sm:$0xff]  ;;  %v739_v36 = vld [vmem:[%s1257_s5 + $0x18] sm:$0xff] }
 0x1a3   :  { %v234_v38 = vmax.f32 %v226_v37, 0.0  ;;  %v738_v37 = vld [vmem:[%s1257_s5 + $0x10] sm:$0xff] }
 0x1a5   :  { %991 = vmatprep.mubr.msk.f32.mxu0 %vm152_vm1, %v234_v38  ;;  %v737_v38 = vld [vmem:[%s1257_s5 + $0x8] sm:$0xff] }
 0x1a6   :  { %992 = vmatmul.mubr.msk.f32.vlgmr.msra.gmra.mxu0 %vm152_vm1, %v235_v39  ;;  %v736_v39 = vld [vmem:[%s1257_s5] sm:$0xff] }
 0x1a7   :  { %1014 = vmatpush3.msra.mxu0 %v444_v44 }
 0x1a8   :  { %1015 = vmatprep.subr.mxu0 %v443_v45 }
 0x1a9   :  { %1016 = vmatpush3.msra.mxu0 %v443_v45 }
 0x1aa   :  { %1017 = vmatprep.subr.mxu0 %v442_v46 }
 0x1ab   :  { %1018 = vmatpush3.msra.mxu0 %v442_v46 }
 0x1ac   :  { %1019 = vmatprep.subr.mxu0 %v441_v47 }
 0x1ad   :  { %1020 = vmatpush3.msra.mxu0 %v441_v47  ;;  %v866_v47 = vld [vmem:[%s1258_s6] ss:$0 sm:$0xff] }
 0x1ae   :  { %1021 = vmatprep.subr.mxu0 %v440_v55 }
 0x1af   :  { %1022 = vmatpush3.msra.mxu0 %v440_v55 }
 0x1b0   :  { %1023 = vmatprep.subr.mxu0 %v439_v56 }
 0x1b1   :  { %1024 = vmatpush3.msra.mxu0 %v439_v56 }
 0x1b2   :  { %1025 = vmatprep.subr.mxu0 %v438_v57 }
 0x1b3   :  { %1026 = vmatpush3.msra.mxu0 %v438_v57 }
 0x1b4   :  { %1027 = vmatprep.subr.mxu0 %v437_v58 }
 0x1b5   :  { %1028 = vmatpush3.msra.mxu0 %v437_v58 }
 0x1b6   :  { %1051 = vmatprep.subr.mxu0 %v644_v10 }
 0x266   :  { %v993_v49 = vpop.f32.mrf.mxu0 }
 0x267   :  { %v331_v50 = vadd.f32 %v993_v49, %v847_v48 }
 0x268   :  { %v325_v51 = vpop.f32.mrf.mxu0 }
 0x269   :  { %v326_v52 = vadd.f32 %v847_v48, %v325_v51  ;;  %v335_v54 = vmax.f32 %v331_v50, 0.0 }
 0x26b   :  { %v334_v53 = vmax.f32 %v326_v52, 0.0 }
 0x26d   :  { %1010 = vmatprep.mubr.msk.f32.mxu1 %vm152_vm1, %v334_v53 }
 0x26e   :  { %1011 = vmatmul.mubr.msk.f32.vlgmr.msra.gmra.mxu1 %vm152_vm1, %v335_v54 }
 0x26f   :  { %1033 = vmatpush3.msra.mxu1 %v544_v59 }
 0x270   :  { %1034 = vmatprep.subr.mxu1 %v543_v60 }
 0x271   :  { %1035 = vmatpush3.msra.mxu1 %v543_v60 }
 0x272   :  { %1036 = vmatprep.subr.mxu1 %v542_v61 }
 0x273   :  { %1037 = vmatpush3.msra.mxu1 %v542_v61 }
 0x274   :  { %1038 = vmatprep.subr.mxu1 %v541_v62 }
 0x275   :  { %1039 = vmatpush3.msra.mxu1 %v541_v62 }
 0x276   :  { %1040 = vmatprep.subr.mxu1 %v540_v6 }
 0x277   :  { %1041 = vmatpush3.msra.mxu1 %v540_v6 }
 0x278   :  { %1042 = vmatprep.subr.mxu1 %v539_v7 }
 0x279   :  { %1043 = vmatpush3.msra.mxu1 %v539_v7 }
 0x27a   :  { %1044 = vmatprep.subr.mxu1 %v538_v8 }
 0x27b   :  { %1045 = vmatpush3.msra.mxu1 %v538_v8 }
 0x27c   :  { %1046 = vmatprep.subr.mxu1 %v537_v9 }
 0x27d   :  { %1047 = vmatpush3.msra.mxu1 %v537_v9 }
 0x27e   :  { %1070 = vmatprep.subr.mxu1 %v743_v32 }
 0x32e   :  { %v1012_v0 = vpop.f32.mrf.mxu1 }
 0x32f   :  { %v431_v1 = vadd.f32 %v1012_v0, %v851_v63 }
 0x330   :  { %v425_v2 = vpop.f32.mrf.mxu1 }
 0x331   :  { %v426_v3 = vadd.f32 %v851_v63, %v425_v2  ;;  %v435_v5 = vmax.f32 %v431_v1, 0.0 }
 0x333   :  { %v434_v4 = vmax.f32 %v426_v3, 0.0 }
 0x335   :  { %1029 = vmatprep.mubr.msk.f32.mxu0 %vm152_vm1, %v434_v4 }
 0x336   :  { %1030 = vmatmul.mubr.msk.f32.vlgmr.msra.gmra.mxu0 %vm152_vm1, %v435_v5 }
 0x337   :  { %1052 = vmatpush3.msra.mxu0 %v644_v10 }
 0x338   :  { %1053 = vmatprep.subr.mxu0 %v643_v11 }
 0x339   :  { %1054 = vmatpush3.msra.mxu0 %v643_v11 }
 0x33a   :  { %1055 = vmatprep.subr.mxu0 %v642_v12 }
 0x33b   :  { %1056 = vmatpush3.msra.mxu0 %v642_v12 }
 0x33c   :  { %1057 = vmatprep.subr.mxu0 %v641_v13 }
 0x33d   :  { %1058 = vmatpush3.msra.mxu0 %v641_v13 }
 0x33e   :  { %1059 = vmatprep.subr.mxu0 %v640_v21 }
 0x33f   :  { %1060 = vmatpush3.msra.mxu0 %v640_v21 }
 0x340   :  { %1061 = vmatprep.subr.mxu0 %v639_v22 }
 0x341   :  { %1062 = vmatpush3.msra.mxu0 %v639_v22 }
 0x342   :  { %1063 = vmatprep.subr.mxu0 %v638_v23 }
 0x343   :  { %1064 = vmatpush3.msra.mxu0 %v638_v23 }
 0x344   :  { %1065 = vmatprep.subr.mxu0 %v637_v24 }
 0x345   :  { %1066 = vmatpush3.msra.mxu0 %v637_v24 }
 0x3f6   :  { %v1031_v15 = vpop.f32.mrf.mxu0 }
 0x3f7   :  { %v531_v16 = vadd.f32 %v1031_v15, %v855_v14 }
 0x3f8   :  { %v525_v17 = vpop.f32.mrf.mxu0 }
 0x3f9   :  { %v526_v18 = vadd.f32 %v855_v14, %v525_v17  ;;  %v535_v20 = vmax.f32 %v531_v16, 0.0 }
 0x3fb   :  { %v534_v19 = vmax.f32 %v526_v18, 0.0 }
 0x3fd   :  { %1048 = vmatprep.mubr.msk.f32.mxu1 %vm152_vm1, %v534_v19 }
 0x3fe   :  { %1049 = vmatmul.mubr.msk.f32.vlgmr.msra.gmra.mxu1 %vm152_vm1, %v535_v20 }
 0x3ff   :  { %1071 = vmatpush3.msra.mxu1 %v743_v32 }
 0x400   :  { %1072 = vmatprep.subr.mxu1 %v742_v33 }
 0x401   :  { %1073 = vmatpush3.msra.mxu1 %v742_v33 }
 0x402   :  { %1074 = vmatprep.subr.mxu1 %v741_v34 }
 0x403   :  { %1075 = vmatpush3.msra.mxu1 %v741_v34 }
 0x404   :  { %1076 = vmatprep.subr.mxu1 %v740_v35 }
 0x405   :  { %1077 = vmatpush3.msra.mxu1 %v740_v35 }
 0x406   :  { %1078 = vmatprep.subr.mxu1 %v739_v36 }
 0x407   :  { %1079 = vmatpush3.msra.mxu1 %v739_v36 }
 0x408   :  { %1080 = vmatprep.subr.mxu1 %v738_v37 }
 0x409   :  { %1081 = vmatpush3.msra.mxu1 %v738_v37 }
 0x40a   :  { %1082 = vmatprep.subr.mxu1 %v737_v38 }
 0x40b   :  { %1083 = vmatpush3.msra.mxu1 %v737_v38 }
 0x40c   :  { %1084 = vmatprep.subr.mxu1 %v736_v39 }
 0x40d   :  { %1085 = vmatpush3.msra.mxu1 %v736_v39 }
 0x4be   :  { %v1050_v26 = vpop.f32.mrf.mxu1 }
 0x4bf   :  { %v631_v27 = vadd.f32 %v1050_v26, %v859_v25 }
 0x4c0   :  { %v625_v28 = vpop.f32.mrf.mxu1 }
 0x4c1   :  { %v626_v29 = vadd.f32 %v859_v25, %v625_v28  ;;  %v635_v31 = vmax.f32 %v631_v27, 0.0 }
 0x4c3   :  { %v634_v30 = vmax.f32 %v626_v29, 0.0 }
 0x4c5   :  { %1067 = vmatprep.mubr.msk.f32.mxu0 %vm152_vm1, %v634_v30 }
 0x4c6   :  { %1068 = vmatmul.mubr.msk.f32.vlgmr.msra.gmra.mxu0 %vm152_vm1, %v635_v31 }
 0x586   :  { %v1069_v41 = vpop.f32.mrf.mxu0 }
 0x587   :  { %v731_v42 = vadd.f32 %v1069_v41, %v863_v40 }
 0x588   :  { %v725_v43 = vpop.f32.mrf.mxu0 }
 0x589   :  { %v726_v44 = vadd.f32 %v863_v40, %v725_v43 }
 0x58b   :  { %1092 = vtanh.f32 %v726_v44 }
 0x58c   :  { %1094 = vtanh.f32 %v731_v42 }
 0x598   :  { %v1093_v45 = vpop.eup %1092 }
 0x599   :  { %v1095_v46 = vpop.eup %1094  ;;  %1086 = vmatprep.mubr.msk.f32.mxu1 %vm152_vm1, %v1093_v45 }
 0x59a   :  { %1087 = vmatmul.mubr.msk.f32.vlgmr.msra.gmra.mxu1 %vm152_vm1, %v1095_v46 }
 0x65a   :  { %v1088_v48 = vpop.f32.mrf.mxu1 }
 0x65b   :  { %v829_v49 = vadd.f32 %v1088_v48, %v866_v47 }
 0x65c   :  { %v823_v50 = vpop.f32.mrf.mxu1 }
 0x65d   :  { %834 = vst.msk [vmem:[%s1259_s7 + $0x8] sm:$0xff] %vm832_vm2, %v829_v49  ;;  %v824_v51 = vadd.f32 %v866_v47, %v823_v50 }
 0x65f   :  { %833 = vst.msk [vmem:[%s1259_s7] sm:$0xff] %vm832_vm2, %v824_v51 }
 0x660   :  { %839 = vsyncpa [#allocation3], 1 }

// kernel: tpu_custom_call.1
= control target key start
LH: loop header
LB: loop body
LE: loop exit
PB: predicated region body
PF: predicated region fallthrough
CT: control target
= control target key end

     0   :  { %12 = vsyncpa [#allocation3], 0  ;;  %s1118_s24 = smov [#allocation2]   ;;  %s1252_s0 = inlined_call_operand.vmem [shape: f32[16,32], index: 0, kind: input, shape index: {}]   ;;  %s1253_s1 = inlined_call_operand.vmem [shape: f32[32,64], index: 1, kind: input, shape index: {}]   ;;  %s1254_s2 = inlined_call_operand.vmem [shape: f32[1,64], index: 2, kind: input, shape index: {}]   ;;  %s1255_s3 = inlined_call_operand.hbm [shape: f32[6,64,64], index: 3, kind: input, shape index: {}]   ;;  %s1256_s4 = inlined_call_operand.vmem [shape: f32[6,1,64], index: 4, kind: input, shape index: {}]   ;;  %s1257_s5 = inlined_call_operand.vmem [shape: f32[64,8], index: 5, kind: input, shape index: {}]   ;;  %s1258_s6 = inlined_call_operand.vmem [shape: f32[1,8], index: 6, kind: input, shape index: {}]   ;;  %s1259_s7 = inlined_call_operand.vmem [shape: f32[16,8], index: 7, kind: output, shape index: {}]  }
   0x1   :  { %s24_s25 = sshll.u32 %s1118_s24, 4  ;;  %s25_s25 = int_to_ptr.vmem [resolvable:$true] %s24_s25 }
   0x2   :  { %s1104_s26 = scalar_lea.vmem %s25_s25, 6144  ;;  %p1109_p1 = scmp.lt.s32.totalorder %s25_s25, %s25_s25 }
   0x3   :  { %p1105_p0 = scmp.ne.s32.totalorder %s25_s25, %s1104_s26  ;;  %p1110_p2 = scmp.lt.s32.totalorder %s1104_s26, %s1104_s26 }
   0x5   :  { %p1111_p3 = por %p1110_p2, %p1109_p1 }
   0x7   :  { %p1112_p4 = pnand %p1111_p3, %p1105_p0 }
   0x9   :  { %1115 = shalt.err (!%p1112_p4)
}
   0xa   :  { %s1119_s27 = smov 128   ;;  %s1120_s28 = smov 8  }
   0xb   :  { %30 = dma.hbm_to_vmem [thread:$0]  %s1255_s3, 6144, %s25_s25, [#allocation3], %s1119_s27, %s1119_s27, %s1120_s28  }
   0xc   :  { %1116 = dma.done.wait [#allocation3], 6144  }
   0xd   :  { %1117 = vsyncadd [#allocation3], 4294961152  ;;  %vm53_vm0 = vcmask 261120   ;;  %v45_v0 = vld [vmem:[%s1253_s1 + $0x18] sm:$0xff]  ;;  %v44_v1 = vld [vmem:[%s1253_s1 + $0x10] sm:$0xff]  ;;  %vm152_vm1 = vcmask 523264  }
   0xe   :  { %945 = vmatprep.subr.mxu0 %v45_v0  ;;  %v40_v2 = vld [vmem:[%s1252_s0] sm:$0xff]  ;;  %v43_v3 = vld [vmem:[%s1253_s1 + $0x8] sm:$0xff]  ;;  %v144_v4 = vld [vmem:[#allocation2 + $0x38] sm:$0xff]  ;;  %vm832_vm2 = vcmask 64512  }
   0xf   :  { %946 = vmatpush3.msra.mxu0 %v45_v0  ;;  %953 = vmatprep.mubr.msk.f32.mxu0 %vm53_vm0, %v40_v2  ;;  %v143_v5 = vld [vmem:[#allocation2 + $0x30] sm:$0xff]  ;;  %v42_v6 = vld [vmem:[%s1253_s1] sm:$0xff]  ;;  %v142_v7 = vld [vmem:[#allocation2 + $0x28] sm:$0xff] }
  0x10   :  { %947 = vmatprep.subr.mxu0 %v44_v1  ;;  %956 = vmatprep.subr.mxu1 %v144_v4  ;;  %v41_v8 = vld [vmem:[%s1252_s0 + $0x8] sm:$0xff]  ;;  %v141_v9 = vld [vmem:[#allocation2 + $0x20] sm:$0xff]  ;;  %v140_v10 = vld [vmem:[#allocation2 + $0x18] sm:$0xff] }
  0x11   :  { %948 = vmatpush3.msra.mxu0 %v44_v1  ;;  %957 = vmatpush3.msra.mxu1 %v144_v4  ;;  %v139_v11 = vld [vmem:[#allocation2 + $0x10] sm:$0xff]  ;;  %v138_v12 = vld [vmem:[#allocation2 + $0x8] sm:$0xff]  ;;  %v137_v13 = vld [vmem:[#allocation2] sm:$0xff] }
  0x12   :  { %949 = vmatprep.subr.mxu0 %v43_v3  ;;  %958 = vmatprep.subr.mxu1 %v143_v5  ;;  %v244_v14 = vld [vmem:[#allocation2 + $0x78] sm:$0xff]  ;;  %v243_v15 = vld [vmem:[#allocation2 + $0x70] sm:$0xff]  ;;  %v242_v16 = vld [vmem:[#allocation2 + $0x68] sm:$0xff] }
  0x13   :  { %950 = vmatpush3.msra.mxu0 %v43_v3  ;;  %959 = vmatpush3.msra.mxu1 %v143_v5  ;;  %v241_v17 = vld [vmem:[#allocation2 + $0x60] sm:$0xff]  ;;  %v240_v25 = vld [vmem:[#allocation2 + $0x58] sm:$0xff]  ;;  %v239_v26 = vld [vmem:[#allocation2 + $0x50] sm:$0xff] }
  0x14   :  { %951 = vmatprep.subr.mxu0 %v42_v6  ;;  %960 = vmatprep.subr.mxu1 %v142_v7  ;;  %v840_v18 = vld [vmem:[%s1254_s2] ss:$0 sm:$0xff]  ;;  %v238_v27 = vld [vmem:[#allocation2 + $0x48] sm:$0xff]  ;;  %v344_v29 = vld [vmem:[#allocation2 + $0xb8] sm:$0xff] }
  0x15   :  { %952 = vmatpush3.msra.mxu0 %v42_v6  ;;  %961 = vmatpush3.msra.mxu1 %v142_v7  ;;  %v237_v28 = vld [vmem:[#allocation2 + $0x40] sm:$0xff]  ;;  %v343_v30 = vld [vmem:[#allocation2 + $0xb0] sm:$0xff]  ;;  %v342_v31 = vld [vmem:[#allocation2 + $0xa8] sm:$0xff] }
  0x16   :  { %954 = vmatmul.mubr.msk.f32.vlgmr.msra.gmra.mxu0 %vm53_vm0, %v41_v8  ;;  %962 = vmatprep.subr.mxu1 %v141_v9  ;;  %v341_v32 = vld [vmem:[#allocation2 + $0xa0] sm:$0xff]  ;;  %v340_v40 = vld [vmem:[#allocation2 + $0x98] sm:$0xff]  ;;  %v339_v41 = vld [vmem:[#allocation2 + $0x90] sm:$0xff] }
  0x17   :  { %963 = vmatpush3.msra.mxu1 %v141_v9  ;;  %975 = vmatprep.subr.mxu0 %v244_v14  ;;  %v843_v33 = vld [vmem:[%s1256_s4] ss:$0 sm:$0xff]  ;;  %v338_v42 = vld [vmem:[#allocation2 + $0x88] sm:$0xff]  ;;  %v444_v44 = vld [vmem:[#allocation2 + $0xf8] sm:$0xff] }
  0x18   :  { %964 = vmatprep.subr.mxu1 %v140_v10  ;;  %976 = vmatpush3.msra.mxu0 %v244_v14  ;;  %v337_v43 = vld [vmem:[#allocation2 + $0x80] sm:$0xff]  ;;  %v443_v45 = vld [vmem:[#allocation2 + $0xf0] sm:$0xff]  ;;  %v442_v46 = vld [vmem:[#allocation2 + $0xe8] sm:$0xff] }
  0x19   :  { %965 = vmatpush3.msra.mxu1 %v140_v10  ;;  %977 = vmatprep.subr.mxu0 %v243_v15  ;;  %v441_v47 = vld [vmem:[#allocation2 + $0xe0] sm:$0xff]  ;;  %v440_v55 = vld [vmem:[#allocation2 + $0xd8] sm:$0xff]  ;;  %v439_v56 = vld [vmem:[#allocation2 + $0xd0] sm:$0xff] }
  0x1a   :  { %966 = vmatprep.subr.mxu1 %v139_v11  ;;  %978 = vmatpush3.msra.mxu0 %v243_v15  ;;  %v847_v48 = vld [vmem:[%s1256_s4 + $0x1] ss:$0 sm:$0xff]  ;;  %v438_v57 = vld [vmem:[#allocation2 + $0xc8] sm:$0xff]  ;;  %v544_v59 = vld [vmem:[#allocation2 + $0x138] sm:$0xff] }
  0x1b   :  { %967 = vmatpush3.msra.mxu1 %v139_v11  ;;  %979 = vmatprep.subr.mxu0 %v242_v16  ;;  %v437_v58 = vld [vmem:[#allocation2 + $0xc0] sm:$0xff]  ;;  %v543_v60 = vld [vmem:[#allocation2 + $0x130] sm:$0xff]  ;;  %v542_v61 = vld [vmem:[#allocation2 + $0x128] sm:$0xff] }
  0x1c   :  { %968 = vmatprep.subr.mxu1 %v138_v12  ;;  %980 = vmatpush3.msra.mxu0 %v242_v16  ;;  %v541_v62 = vld [vmem:[#allocation2 + $0x120] sm:$0xff]  ;;  %v540_v6 = vld [vmem:[#allocation2 + $0x118] sm:$0xff]  ;;  %v539_v7 = vld [vmem:[#allocation2 + $0x110] sm:$0xff] }
  0x1d   :  { %969 = vmatpush3.msra.mxu1 %v138_v12  ;;  %981 = vmatprep.subr.mxu0 %v241_v17  ;;  %v851_v63 = vld [vmem:[%s1256_s4 + $0x2] ss:$0 sm:$0xff]  ;;  %v538_v8 = vld [vmem:[#allocation2 + $0x108] sm:$0xff]  ;;  %v644_v10 = vld [vmem:[#allocation2 + $0x178] sm:$0xff] }
  0x1e   :  { %970 = vmatprep.subr.mxu1 %v137_v13  ;;  %982 = vmatpush3.msra.mxu0 %v241_v17  ;;  %v537_v9 = vld [vmem:[#allocation2 + $0x100] sm:$0xff]  ;;  %v643_v11 = vld [vmem:[#allocation2 + $0x170] sm:$0xff]  ;;  %v642_v12 = vld [vmem:[#allocation2 + $0x168] sm:$0xff] }
  0x1f   :  { %971 = vmatpush3.msra.mxu1 %v137_v13  ;;  %983 = vmatprep.subr.mxu0 %v240_v25  ;;  %v641_v13 = vld [vmem:[#allocation2 + $0x160] sm:$0xff] }
  0x20   :  { %984 = vmatpush3.msra.mxu0 %v240_v25  ;;  %994 = vmatprep.subr.mxu1 %v344_v29  ;;  %v855_v14 = vld [vmem:[%s1256_s4 + $0x3] ss:$0 sm:$0xff]  ;;  %v859_v25 = vld [vmem:[%s1256_s4 + $0x4] ss:$0 sm:$0xff] }
  0x21   :  { %985 = vmatprep.subr.mxu0 %v239_v26 }
  0x22   :  { %986 = vmatpush3.msra.mxu0 %v239_v26 }
  0x23   :  { %987 = vmatprep.subr.mxu0 %v238_v27 }
  0x24   :  { %988 = vmatpush3.msra.mxu0 %v238_v27 }
  0x25   :  { %989 = vmatprep.subr.mxu0 %v237_v28 }
  0x26   :  { %990 = vmatpush3.msra.mxu0 %v237_v28 }
  0x27   :  { %1013 = vmatprep.subr.mxu0 %v444_v44 }
  0xd6   :  { %v955_v19 = vpop.f32.mrf.mxu0 }
  0xd7   :  { %v132_v20 = vadd.f32 %v955_v19, %v840_v18 }
  0xd8   :  { %v126_v21 = vpop.f32.mrf.mxu0 }
  0xd9   :  { %v127_v22 = vadd.f32 %v840_v18, %v126_v21  ;;  %v136_v24 = vmax.f32 %v132_v20, 0.0  ;;  %v640_v21 = vld [vmem:[#allocation2 + $0x158] sm:$0xff] }
  0xdb   :  { %v135_v23 = vmax.f32 %v127_v22, 0.0  ;;  %v639_v22 = vld [vmem:[#allocation2 + $0x150] sm:$0xff] }
  0xdd   :  { %972 = vmatprep.mubr.msk.f32.mxu1 %vm152_vm1, %v135_v23  ;;  %v638_v23 = vld [vmem:[#allocation2 + $0x148] sm:$0xff] }
  0xde   :  { %973 = vmatmul.mubr.msk.f32.vlgmr.msra.gmra.mxu1 %vm152_vm1, %v136_v24  ;;  %v637_v24 = vld [vmem:[#allocation2 + $0x140] sm:$0xff] }
  0xdf   :  { %995 = vmatpush3.msra.mxu1 %v344_v29 }
  0xe0   :  { %996 = vmatprep.subr.mxu1 %v343_v30 }
  0xe1   :  { %997 = vmatpush3.msra.mxu1 %v343_v30 }
  0xe2   :  { %998 = vmatprep.subr.mxu1 %v342_v31 }
  0xe3   :  { %999 = vmatpush3.msra.mxu1 %v342_v31 }
  0xe4   :  { %1000 = vmatprep.subr.mxu1 %v341_v32 }
  0xe5   :  { %1001 = vmatpush3.msra.mxu1 %v341_v32  ;;  %v743_v32 = vld [vmem:[%s1257_s5 + $0x38] sm:$0xff] }
  0xe6   :  { %1002 = vmatprep.subr.mxu1 %v340_v40 }
  0xe7   :  { %1003 = vmatpush3.msra.mxu1 %v340_v40  ;;  %v863_v40 = vld [vmem:[%s1256_s4 + $0x5] ss:$0 sm:$0xff] }
  0xe8   :  { %1004 = vmatprep.subr.mxu1 %v339_v41 }
  0xe9   :  { %1005 = vmatpush3.msra.mxu1 %v339_v41 }
  0xea   :  { %1006 = vmatprep.subr.mxu1 %v338_v42 }
  0xeb   :  { %1007 = vmatpush3.msra.mxu1 %v338_v42 }
  0xec   :  { %1008 = vmatprep.subr.mxu1 %v337_v43 }
  0xed   :  { %1009 = vmatpush3.msra.mxu1 %v337_v43 }
  0xee   :  { %1032 = vmatprep.subr.mxu1 %v544_v59 }
 0x19e   :  { %v974_v34 = vpop.f32.mrf.mxu1 }
 0x19f   :  { %v231_v35 = vadd.f32 %v974_v34, %v843_v33  ;;  %v741_v34 = vld [vmem:[%s1257_s5 + $0x28] sm:$0xff] }
 0x1a0   :  { %v225_v36 = vpop.f32.mrf.mxu1 }
 0x1a1   :  { %v226_v37 = vadd.f32 %v843_v33, %v225_v36  ;;  %v235_v39 = vmax.f32 %v231_v35, 0.0  ;;  %v742_v33 = vld [vmem:[%s1257_s5 + $0x30] sm:$0xff]  ;;  %v740_v35 = vld [vmem:[%s1257_s5 + $0x20] sm:$0xff]  ;;  %v739_v36 = vld [vmem:[%s1257_s5 + $0x18] sm:$0xff] }
 0x1a3   :  { %v234_v38 = vmax.f32 %v226_v37, 0.0  ;;  %v738_v37 = vld [vmem:[%s1257_s5 + $0x10] sm:$0xff] }
 0x1a5   :  { %991 = vmatprep.mubr.msk.f32.mxu0 %vm152_vm1, %v234_v38  ;;  %v737_v38 = vld [vmem:[%s1257_s5 + $0x8] sm:$0xff] }
 0x1a6   :  { %992 = vmatmul.mubr.msk.f32.vlgmr.msra.gmra.mxu0 %vm152_vm1, %v235_v39  ;;  %v736_v39 = vld [vmem:[%s1257_s5] sm:$0xff] }
 0x1a7   :  { %1014 = vmatpush3.msra.mxu0 %v444_v44 }
 0x1a8   :  { %1015 = vmatprep.subr.mxu0 %v443_v45 }
 0x1a9   :  { %1016 = vmatpush3.msra.mxu0 %v443_v45 }
 0x1aa   :  { %1017 = vmatprep.subr.mxu0 %v442_v46 }
 0x1ab   :  { %1018 = vmatpush3.msra.mxu0 %v442_v46 }
 0x1ac   :  { %1019 = vmatprep.subr.mxu0 %v441_v47 }
 0x1ad   :  { %1020 = vmatpush3.msra.mxu0 %v441_v47  ;;  %v866_v47 = vld [vmem:[%s1258_s6] ss:$0 sm:$0xff] }
 0x1ae   :  { %1021 = vmatprep.subr.mxu0 %v440_v55 }
 0x1af   :  { %1022 = vmatpush3.msra.mxu0 %v440_v55 }
 0x1b0   :  { %1023 = vmatprep.subr.mxu0 %v439_v56 }
 0x1b1   :  { %1024 = vmatpush3.msra.mxu0 %v439_v56 }
 0x1b2   :  { %1025 = vmatprep.subr.mxu0 %v438_v57 }
 0x1b3   :  { %1026 = vmatpush3.msra.mxu0 %v438_v57 }
 0x1b4   :  { %1027 = vmatprep.subr.mxu0 %v437_v58 }
 0x1b5   :  { %1028 = vmatpush3.msra.mxu0 %v437_v58 }
 0x1b6   :  { %1051 = vmatprep.subr.mxu0 %v644_v10 }
 0x266   :  { %v993_v49 = vpop.f32.mrf.mxu0 }
 0x267   :  { %v331_v50 = vadd.f32 %v993_v49, %v847_v48 }
 0x268   :  { %v325_v51 = vpop.f32.mrf.mxu0 }
 0x269   :  { %v326_v52 = vadd.f32 %v847_v48, %v325_v51  ;;  %v335_v54 = vmax.f32 %v331_v50, 0.0 }
 0x26b   :  { %v334_v53 = vmax.f32 %v326_v52, 0.0 }
 0x26d   :  { %1010 = vmatprep.mubr.msk.f32.mxu1 %vm152_vm1, %v334_v53 }
 0x26e   :  { %1011 = vmatmul.mubr.msk.f32.vlgmr.msra.gmra.mxu1 %vm152_vm1, %v335_v54 }
 0x26f   :  { %1033 = vmatpush3.msra.mxu1 %v544_v59 }
 0x270   :  { %1034 = vmatprep.subr.mxu1 %v543_v60 }
 0x271   :  { %1035 = vmatpush3.msra.mxu1 %v543_v60 }
 0x272   :  { %1036 = vmatprep.subr.mxu1 %v542_v61 }
 0x273   :  { %1037 = vmatpush3.msra.mxu1 %v542_v61 }
 0x274   :  { %1038 = vmatprep.subr.mxu1 %v541_v62 }
 0x275   :  { %1039 = vmatpush3.msra.mxu1 %v541_v62 }
 0x276   :  { %1040 = vmatprep.subr.mxu1 %v540_v6 }
 0x277   :  { %1041 = vmatpush3.msra.mxu1 %v540_v6 }
 0x278   :  { %1042 = vmatprep.subr.mxu1 %v539_v7 }
 0x279   :  { %1043 = vmatpush3.msra.mxu1 %v539_v7 }
 0x27a   :  { %1044 = vmatprep.subr.mxu1 %v538_v8 }
 0x27b   :  { %1045 = vmatpush3.msra.mxu1 %v538_v8 }
 0x27c   :  { %1046 = vmatprep.subr.mxu1 %v537_v9 }
 0x27d   :  { %1047 = vmatpush3.msra.mxu1 %v537_v9 }
 0x27e   :  { %1070 = vmatprep.subr.mxu1 %v743_v32 }
 0x32e   :  { %v1012_v0 = vpop.f32.mrf.mxu1 }
 0x32f   :  { %v431_v1 = vadd.f32 %v1012_v0, %v851_v63 }
 0x330   :  { %v425_v2 = vpop.f32.mrf.mxu1 }
 0x331   :  { %v426_v3 = vadd.f32 %v851_v63, %v425_v2  ;;  %v435_v5 = vmax.f32 %v431_v1, 0.0 }
 0x333   :  { %v434_v4 = vmax.f32 %v426_v3, 0.0 }
 0x335   :  { %1029 = vmatprep.mubr.msk.f32.mxu0 %vm152_vm1, %v434_v4 }
 0x336   :  { %1030 = vmatmul.mubr.msk.f32.vlgmr.msra.gmra.mxu0 %vm152_vm1, %v435_v5 }
 0x337   :  { %1052 = vmatpush3.msra.mxu0 %v644_v10 }
 0x338   :  { %1053 = vmatprep.subr.mxu0 %v643_v11 }
 0x339   :  { %1054 = vmatpush3.msra.mxu0 %v643_v11 }
 0x33a   :  { %1055 = vmatprep.subr.mxu0 %v642_v12 }
 0x33b   :  { %1056 = vmatpush3.msra.mxu0 %v642_v12 }
 0x33c   :  { %1057 = vmatprep.subr.mxu0 %v641_v13 }
 0x33d   :  { %1058 = vmatpush3.msra.mxu0 %v641_v13 }
 0x33e   :  { %1059 = vmatprep.subr.mxu0 %v640_v21 }
 0x33f   :  { %1060 = vmatpush3.msra.mxu0 %v640_v21 }
 0x340   :  { %1061 = vmatprep.subr.mxu0 %v639_v22 }
 0x341   :  { %1062 = vmatpush3.msra.mxu0 %v639_v22 }
 0x342   :  { %1063 = vmatprep.subr.mxu0 %v638_v23 }
 0x343   :  { %1064 = vmatpush3.msra.mxu0 %v638_v23 }
 0x344   :  { %1065 = vmatprep.subr.mxu0 %v637_v24 }
 0x345   :  { %1066 = vmatpush3.msra.mxu0 %v637_v24 }
 0x3f6   :  { %v1031_v15 = vpop.f32.mrf.mxu0 }
 0x3f7   :  { %v531_v16 = vadd.f32 %v1031_v15, %v855_v14 }
 0x3f8   :  { %v525_v17 = vpop.f32.mrf.mxu0 }
 0x3f9   :  { %v526_v18 = vadd.f32 %v855_v14, %v525_v17  ;;  %v535_v20 = vmax.f32 %v531_v16, 0.0 }
 0x3fb   :  { %v534_v19 = vmax.f32 %v526_v18, 0.0 }
 0x3fd   :  { %1048 = vmatprep.mubr.msk.f32.mxu1 %vm152_vm1, %v534_v19 }
 0x3fe   :  { %1049 = vmatmul.mubr.msk.f32.vlgmr.msra.gmra.mxu1 %vm152_vm1, %v535_v20 }
 0x3ff   :  { %1071 = vmatpush3.msra.mxu1 %v743_v32 }
 0x400   :  { %1072 = vmatprep.subr.mxu1 %v742_v33 }
 0x401   :  { %1073 = vmatpush3.msra.mxu1 %v742_v33 }
 0x402   :  { %1074 = vmatprep.subr.mxu1 %v741_v34 }
 0x403   :  { %1075 = vmatpush3.msra.mxu1 %v741_v34 }
 0x404   :  { %1076 = vmatprep.subr.mxu1 %v740_v35 }
 0x405   :  { %1077 = vmatpush3.msra.mxu1 %v740_v35 }
 0x406   :  { %1078 = vmatprep.subr.mxu1 %v739_v36 }
 0x407   :  { %1079 = vmatpush3.msra.mxu1 %v739_v36 }
 0x408   :  { %1080 = vmatprep.subr.mxu1 %v738_v37 }
 0x409   :  { %1081 = vmatpush3.msra.mxu1 %v738_v37 }
 0x40a   :  { %1082 = vmatprep.subr.mxu1 %v737_v38 }
 0x40b   :  { %1083 = vmatpush3.msra.mxu1 %v737_v38 }
 0x40c   :  { %1084 = vmatprep.subr.mxu1 %v736_v39 }
 0x40d   :  { %1085 = vmatpush3.msra.mxu1 %v736_v39 }
 0x4be   :  { %v1050_v26 = vpop.f32.mrf.mxu1 }
 0x4bf   :  { %v631_v27 = vadd.f32 %v1050_v26, %v859_v25 }
 0x4c0   :  { %v625_v28 = vpop.f32.mrf.mxu1 }
 0x4c1   :  { %v626_v29 = vadd.f32 %v859_v25, %v625_v28  ;;  %v635_v31 = vmax.f32 %v631_v27, 0.0 }
 0x4c3   :  { %v634_v30 = vmax.f32 %v626_v29, 0.0 }
 0x4c5   :  { %1067 = vmatprep.mubr.msk.f32.mxu0 %vm152_vm1, %v634_v30 }
 0x4c6   :  { %1068 = vmatmul.mubr.msk.f32.vlgmr.msra.gmra.mxu0 %vm152_vm1, %v635_v31 }
 0x586   :  { %v1069_v41 = vpop.f32.mrf.mxu0 }
 0x587   :  { %v731_v42 = vadd.f32 %v1069_v41, %v863_v40 }
 0x588   :  { %v725_v43 = vpop.f32.mrf.mxu0 }
 0x589   :  { %v726_v44 = vadd.f32 %v863_v40, %v725_v43 }
 0x58b   :  { %1092 = vtanh.f32 %v726_v44 }
 0x58c   :  { %1094 = vtanh.f32 %v731_v42 }
 0x598   :  { %v1093_v45 = vpop.eup %1092 }
 0x599   :  { %v1095_v46 = vpop.eup %1094  ;;  %1086 = vmatprep.mubr.msk.f32.mxu1 %vm152_vm1, %v1093_v45 }
 0x59a   :  { %1087 = vmatmul.mubr.msk.f32.vlgmr.msra.gmra.mxu1 %vm152_vm1, %v1095_v46 }
 0x65a   :  { %v1088_v48 = vpop.f32.mrf.mxu1 }
 0x65b   :  { %v829_v49 = vadd.f32 %v1088_v48, %v866_v47 }
 0x65c   :  { %v823_v50 = vpop.f32.mrf.mxu1 }
 0x65d   :  { %834 = vst.msk [vmem:[%s1259_s7 + $0x8] sm:$0xff] %vm832_vm2, %v829_v49  ;;  %v824_v51 = vadd.f32 %v866_v47, %v823_v50 }
 0x65f   :  { %833 = vst.msk [vmem:[%s1259_s7] sm:$0xff] %vm832_vm2, %v824_v51 }
 0x660   :  { %839 = vsyncpa [#allocation3], 1 }

</bundles_post_ra>
